<compile_context>
chip_gen: v5e
topology: v5e:2x2
jax: 0.10.0
libtpu: 0.0.40
codegen_flags: <defaults>
</compile_context>

<pallas_src>
import functools
import math

import jax
import jax.numpy as jnp
from jax.experimental import pallas as pl
from jax.experimental.pallas import tpu as pltpu


# ---------------------------------------------------------------------------
# Kernel: one grid step = (batch b, q-tile qi, kv-tile ki).
# ---------------------------------------------------------------------------
def self_attn_block_kernel(
    xq_ref, xkv_ref,                     # x viewed as Q tile / KV tile
    gamma_ref, beta_ref,                 # LayerNorm params (1, D) f32
    wq_ref, bq_ref,                      # Q projection   (D, D) bf16 / (1, D) f32
    wkv_ref, bkv_ref,                    # fused K|V proj (D, 2D) bf16 / (1, 2D) f32
    wo_ref, bo_ref,                      # out projection (D, D) bf16 / (1, D) f32
    o_ref,                               # output block (1, TQ, D)
    q_sc, m_sc, l_sc, acc_sc, attn_sc,   # scratch
    *, nhead: int, eps: float,
):
    ki = pl.program_id(2)
    n_kv = pl.num_programs(2)
    D = xq_ref.shape[-1]
    dh = D // nhead
    scale = 1.0 / math.sqrt(dh)

    gamma = gamma_ref[...]
    beta = beta_ref[...]

    def layer_norm(t):                   # f32 in / f32 out
        mu = jnp.mean(t, axis=-1, keepdims=True)
        var = jnp.mean(jnp.square(t - mu), axis=-1, keepdims=True)
        return (t - mu) * jax.lax.rsqrt(var + eps) * gamma + beta

    # ---- Q-tile work: only once per (batch, q-tile) ----
    @pl.when(ki == 0)
    def _init():
        xq = xq_ref[0].astype(jnp.float32)
        yq = layer_norm(xq).astype(jnp.bfloat16)
        q = jnp.dot(yq, wq_ref[...], preferred_element_type=jnp.float32) + bq_ref[...]
        q = q * scale                                   # fold 1/sqrt(dh) into q once
        for h in range(nhead):                          # split once, head-major cache
            q_sc[h] = q[:, h * dh:(h + 1) * dh].astype(q_sc.dtype)
        m_sc[...] = jnp.full(m_sc.shape, -jnp.inf, m_sc.dtype)
        l_sc[...] = jnp.zeros(l_sc.shape, l_sc.dtype)
        acc_sc[...] = jnp.zeros(acc_sc.shape, acc_sc.dtype)

    # ---- KV tile: LayerNorm + fused K|V projection (one MXU pass) ----
    xkv = xkv_ref[0].astype(jnp.float32)
    ykv = layer_norm(xkv).astype(jnp.bfloat16)
    kv = jnp.dot(ykv, wkv_ref[...], preferred_element_type=jnp.float32) + bkv_ref[...]

    # ---- per-head online-softmax update (nhead small & static -> unrolled) ----
    dn_qkT = (((1,), (1,)), ((), ()))    # contract head dims; no explicit k transpose
    for h in range(nhead):
        kh = kv[:, h * dh:(h + 1) * dh].astype(jnp.bfloat16)
        vh = kv[:, D + h * dh: D + (h + 1) * dh].astype(jnp.bfloat16)
        s = jax.lax.dot_general(q_sc[h], kh, dn_qkT,
                                preferred_element_type=jnp.float32)      # (TQ, TKV)
        m_prev = m_sc[h]
        m_new = jnp.maximum(m_prev, jnp.max(s, axis=-1, keepdims=True))
        alpha = jnp.exp(m_prev - m_new)
        p = jnp.exp(s - m_new)
        l_sc[h] = alpha * l_sc[h] + jnp.sum(p, axis=-1, keepdims=True)
        acc_sc[h] = alpha * acc_sc[h] + jnp.dot(
            p.astype(jnp.bfloat16), vh, preferred_element_type=jnp.float32)
        m_sc[h] = m_new

    # ---- finalize: normalize, output projection, residual ----
    @pl.when(ki == n_kv - 1)
    def _finalize():
        for h in range(nhead):
            inv_l = pl.reciprocal(l_sc[h], approx=True)
            attn_sc[:, h * dh:(h + 1) * dh] = acc_sc[h] * inv_l   # direct scratch write
        out = jnp.dot(attn_sc[...].astype(jnp.bfloat16), wo_ref[...],
                      preferred_element_type=jnp.float32) + bo_ref[...]
        o_ref[0] = (xq_ref[0].astype(jnp.float32) + out).astype(o_ref.dtype)


# ---------------------------------------------------------------------------
# Wrapper: builds grid / BlockSpecs / scratch and calls pallas_call.
# Weights are stored pre-transposed so the kernel computes `y @ W` directly;
# K and V weights are fused into a single (D, 2D) matrix here.
# ---------------------------------------------------------------------------
def self_attn_block(x, params, *, nhead: int, eps: float = 1e-5, tq=None, tkv=None):
    B, S, D = x.shape
    assert D % nhead == 0
    dh = D // nhead
    tq = min(S, 256) if tq is None else tq
    tkv = min(S, 256) if tkv is None else tkv
    assert S % tq == 0 and S % tkv == 0
    assert (tq % 8 == 0) or (tq == S)
    assert (tkv % 8 == 0) or (tkv == S)

    f32, bf16 = jnp.float32, jnp.bfloat16
    gamma = params["gamma"].astype(f32).reshape(1, D)
    beta = params["beta"].astype(f32).reshape(1, D)
    wq = params["wq"].astype(bf16)
    bq = params["bq"].astype(f32).reshape(1, D)
    wkv = jnp.concatenate([params["wk"], params["wv"]], axis=1).astype(bf16)      # (D, 2D)
    bkv = jnp.concatenate([params["bk"], params["bv"]], axis=1).astype(f32).reshape(1, 2 * D)
    wo = params["wo"].astype(bf16)
    bo = params["bo"].astype(f32).reshape(1, D)

    grid = (B, S // tq, S // tkv)

    def const(shape):
        return pl.BlockSpec(shape, lambda b, qi, ki: (0,) * len(shape))

    in_specs = [
        pl.BlockSpec((1, tq, D), lambda b, qi, ki: (b, qi, 0)),     # x (Q-tile view)
        pl.BlockSpec((1, tkv, D), lambda b, qi, ki: (b, ki, 0)),    # x (KV-tile view)
        const((1, D)), const((1, D)),                               # gamma, beta
        const((D, D)), const((1, D)),                               # wq, bq
        const((D, 2 * D)), const((1, 2 * D)),                       # wkv, bkv
        const((D, D)), const((1, D)),                               # wo, bo
    ]
    out_spec = pl.BlockSpec((1, tq, D), lambda b, qi, ki: (b, qi, 0))

    kernel = functools.partial(self_attn_block_kernel, nhead=nhead, eps=eps)

    return pl.pallas_call(
        kernel,
        out_shape=jax.ShapeDtypeStruct((B, S, D), x.dtype),
        grid_spec=pltpu.PrefetchScalarGridSpec(
            num_scalar_prefetch=0,
            grid=grid,
            in_specs=in_specs,
            out_specs=out_spec,
            scratch_shapes=[
                pltpu.VMEM((nhead, tq, dh), bf16),     # cached scaled q, head-major
                pltpu.VMEM((nhead, tq, 1), f32),       # running max
                pltpu.VMEM((nhead, tq, 1), f32),       # running softmax denom
                pltpu.VMEM((nhead, tq, dh), f32),      # running numerator
                pltpu.VMEM((tq, D), f32),              # assembled attention output
            ],
        ),
        compiler_params=pltpu.CompilerParams(
            dimension_semantics=("parallel", "parallel", "arbitrary"),
            vmem_limit_bytes=48 * 1024 * 1024,
        ),
    )(x, x, gamma, beta, wq, bq, wkv, bkv, wo, bo)


# ---------------------------------------------------------------------------
# Pure-JAX f32 reference (same math as the PyTorch module) for correctness.
# ---------------------------------------------------------------------------
def ref_forward(x, p, *, nhead: int, eps: float = 1e-5):
    B, S, D = x.shape
    dh = D // nhead
    mu = x.mean(-1, keepdims=True)
    var = ((x - mu) ** 2).mean(-1, keepdims=True)
    y = (x - mu) / jnp.sqrt(var + eps) * p["gamma"] + p["beta"]
    q = y @ p["wq"] + p["bq"]
    k = y @ p["wk"] + p["bk"]
    v = y @ p["wv"] + p["bv"]
    q = q.reshape(B, S, nhead, dh).transpose(0, 2, 1, 3)
    k = k.reshape(B, S, nhead, dh).transpose(0, 2, 1, 3)
    v = v.reshape(B, S, nhead, dh).transpose(0, 2, 1, 3)
    s = jnp.einsum("bhqd,bhkd->bhqk", q, k) / math.sqrt(dh)
    a = jax.nn.softmax(s, axis=-1)
    o = jnp.einsum("bhqk,bhkd->bhqd", a, v)
    o = o.transpose(0, 2, 1, 3).reshape(B, S, D)
    return x + (o @ p["wo"] + p["bo"])


if __name__ == "__main__":
    B, S, D, H = 2, 16, 128, 4   # lane-dense D (multiple of 128); 4 heads, dh=32

    key = jax.random.PRNGKey(0)
    ks = jax.random.split(key, 10)
    wscale = 1.0 / math.sqrt(D)

    params = {
        # LayerNorm params (gamma=1, beta=0, as in nn.LayerNorm default init)
        "gamma": jnp.ones((1, D), jnp.float32),
        "beta": jnp.zeros((1, D), jnp.float32),
        # in_proj weights, stored pre-transposed: q = y @ wq + bq
        "wq": jax.random.normal(ks[0], (D, D), jnp.float32) * wscale,
        "wk": jax.random.normal(ks[1], (D, D), jnp.float32) * wscale,
        "wv": jax.random.normal(ks[2], (D, D), jnp.float32) * wscale,
        "bq": jax.random.normal(ks[3], (1, D), jnp.float32) * 0.02,
        "bk": jax.random.normal(ks[4], (1, D), jnp.float32) * 0.02,
        "bv": jax.random.normal(ks[5], (1, D), jnp.float32) * 0.02,
        # out_proj, pre-transposed
        "wo": jax.random.normal(ks[6], (D, D), jnp.float32) * wscale,
        "bo": jax.random.normal(ks[7], (1, D), jnp.float32) * 0.02,
    }

    x = jax.random.normal(ks[8], (B, S, D), jnp.float32)

    # tq/tkv=8 exercises the multi-tile online-softmax path (grid = (2, 2, 2)).
    out = self_attn_block(x, params, nhead=H, tq=8, tkv=8)
    out = jax.block_until_ready(out)

    ref = jax.block_until_ready(ref_forward(x, params, nhead=H))
    assert out.shape == (B, S, D)
    # bf16 MXU matmuls (f32 accumulation) vs. an all-f32 reference -> loosened tolerance.
    max_err = float(jnp.max(jnp.abs(out - ref)))
    assert max_err < 0.15, f"max abs err {max_err}"

    print("KERNEL_OK")
</pallas_src>

<mosaic_0001>
module attributes {stable_mosaic.version = 11 : i64} {
  func.func @self_attn_block_kernel(%arg0: i32, %arg1: i32, %arg2: i32, %arg3: memref<1x8x128xf32, #tpu.memory_space<vmem>>, %arg4: memref<1x8x128xf32, #tpu.memory_space<vmem>>, %arg5: memref<1x128xf32, #tpu.memory_space<vmem>>, %arg6: memref<1x128xf32, #tpu.memory_space<vmem>>, %arg7: memref<128x128xbf16, #tpu.memory_space<vmem>>, %arg8: memref<1x128xf32, #tpu.memory_space<vmem>>, %arg9: memref<128x256xbf16, #tpu.memory_space<vmem>>, %arg10: memref<1x256xf32, #tpu.memory_space<vmem>>, %arg11: memref<128x128xbf16, #tpu.memory_space<vmem>>, %arg12: memref<1x128xf32, #tpu.memory_space<vmem>>, %arg13: memref<1x8x128xf32, #tpu.memory_space<vmem>>, %arg14: memref<4x8x32xbf16, #tpu.memory_space<vmem>>, %arg15: memref<4x8x1xf32, #tpu.memory_space<vmem>>, %arg16: memref<4x8x1xf32, #tpu.memory_space<vmem>>, %arg17: memref<4x8x32xf32, #tpu.memory_space<vmem>>, %arg18: memref<8x128xf32, #tpu.memory_space<vmem>>) attributes {dimension_semantics = [#tpu.dimension_semantics<parallel>, #tpu.dimension_semantics<parallel>, #tpu.dimension_semantics<arbitrary>], iteration_bounds = array<i64: 2, 2, 2>, scalar_prefetch = 0 : i64, scratch_operands = 5 : i64, tpu.core_type = #tpu.core_type<tc>, window_params = [{transform_indices = @transform_0, window_bounds = array<i64: 1, 8, 128>}, {transform_indices = @transform_1, window_bounds = array<i64: 1, 8, 128>}, {pipeline_mode = #tpu.pipeline_mode<synchronous>, transform_indices = @transform_2, window_bounds = array<i64: 1, 128>}, {pipeline_mode = #tpu.pipeline_mode<synchronous>, transform_indices = @transform_3, window_bounds = array<i64: 1, 128>}, {pipeline_mode = #tpu.pipeline_mode<synchronous>, transform_indices = @transform_4, window_bounds = array<i64: 128, 128>}, {pipeline_mode = #tpu.pipeline_mode<synchronous>, transform_indices = @transform_5, window_bounds = array<i64: 1, 128>}, {pipeline_mode = #tpu.pipeline_mode<synchronous>, transform_indices = @transform_6, window_bounds = array<i64: 128, 256>}, {pipeline_mode = #tpu.pipeline_mode<synchronous>, transform_indices = @transform_7, window_bounds = array<i64: 1, 256>}, {pipeline_mode = #tpu.pipeline_mode<synchronous>, transform_indices = @transform_8, window_bounds = array<i64: 128, 128>}, {pipeline_mode = #tpu.pipeline_mode<synchronous>, transform_indices = @transform_9, window_bounds = array<i64: 1, 128>}, {transform_indices = @transform_10, window_bounds = array<i64: 1, 8, 128>}]} {
    %c0 = arith.constant 0 : index
    %c0_0 = arith.constant 0 : index
    %0 = vector.load %arg5[%c0, %c0_0] : memref<1x128xf32, #tpu.memory_space<vmem>>, vector<1x128xf32>
    %c0_1 = arith.constant 0 : index
    %c0_2 = arith.constant 0 : index
    %1 = vector.load %arg6[%c0_1, %c0_2] : memref<1x128xf32, #tpu.memory_space<vmem>>, vector<1x128xf32>
    %c0_i32 = arith.constant 0 : i32
    %2 = arith.cmpi eq, %arg2, %c0_i32 : i32
    %3 = arith.extui %2 : i1 to i32
    %c0_i32_3 = arith.constant 0 : i32
    %4 = arith.cmpi ne, %3, %c0_i32_3 : i32
    scf.if %4 {
      %c0_114 = arith.constant 0 : index
      %c0_115 = arith.constant 0 : index
      %c0_116 = arith.constant 0 : index
      %194 = vector.load %arg3[%c0_114, %c0_115, %c0_116] : memref<1x8x128xf32, #tpu.memory_space<vmem>>, vector<1x8x128xf32>
      %195 = vector.shape_cast %194 : vector<1x8x128xf32> to vector<8x128xf32>
      %cst_117 = arith.constant dense<0.000000e+00> : vector<8xf32>
      %196 = vector.multi_reduction <add>, %195, %cst_117 [1] : vector<8x128xf32> to vector<8xf32>
      %197 = vector.shape_cast %196 : vector<8xf32> to vector<8x1xf32>
      %cst_118 = arith.constant 1.280000e+02 : f32
      %198 = vector.broadcast %cst_118 : f32 to vector<8x1xf32>
      %199 = arith.divf %197, %198 : vector<8x1xf32>
      %200 = vector.broadcast %199 : vector<8x1xf32> to vector<8x128xf32>
      %201 = arith.subf %195, %200 : vector<8x128xf32>
      %202 = arith.mulf %201, %201 : vector<8x128xf32>
      %cst_119 = arith.constant dense<0.000000e+00> : vector<8xf32>
      %203 = vector.multi_reduction <add>, %202, %cst_119 [1] : vector<8x128xf32> to vector<8xf32>
      %204 = vector.shape_cast %203 : vector<8xf32> to vector<8x1xf32>
      %cst_120 = arith.constant 1.280000e+02 : f32
      %205 = vector.broadcast %cst_120 : f32 to vector<8x1xf32>
      %206 = arith.divf %204, %205 : vector<8x1xf32>
      %207 = vector.broadcast %199 : vector<8x1xf32> to vector<8x128xf32>
      %208 = arith.subf %195, %207 : vector<8x128xf32>
      %cst_121 = arith.constant 9.99999974E-6 : f32
      %209 = vector.broadcast %cst_121 : f32 to vector<8x1xf32>
      %210 = arith.addf %206, %209 : vector<8x1xf32>
      %211 = math.rsqrt %210 : vector<8x1xf32>
      %212 = vector.broadcast %211 : vector<8x1xf32> to vector<8x128xf32>
      %213 = arith.mulf %208, %212 : vector<8x128xf32>
      %214 = vector.broadcast %0 : vector<1x128xf32> to vector<8x128xf32>
      %215 = arith.mulf %213, %214 : vector<8x128xf32>
      %216 = vector.broadcast %1 : vector<1x128xf32> to vector<8x128xf32>
      %217 = arith.addf %215, %216 : vector<8x128xf32>
      %218 = arith.truncf %217 : vector<8x128xf32> to vector<8x128xbf16>
      %c0_122 = arith.constant 0 : index
      %c0_123 = arith.constant 0 : index
      %219 = vector.load %arg7[%c0_122, %c0_123] : memref<128x128xbf16, #tpu.memory_space<vmem>>, vector<128x128xbf16>
      %cst_124 = arith.constant dense<0.000000e+00> : vector<8x128xf32>
      %220 = tpu.matmul %218, %219, %cst_124 {dimension_numbers = #tpu.dot_dimension_numbers<[1], [0], [0], [1], [0, 0, 1, 1], [], []>} : vector<8x128xbf16>, vector<128x128xbf16>, vector<8x128xf32> -> vector<8x128xf32>
      %c0_125 = arith.constant 0 : index
      %c0_126 = arith.constant 0 : index
      %221 = vector.load %arg8[%c0_125, %c0_126] : memref<1x128xf32, #tpu.memory_space<vmem>>, vector<1x128xf32>
      %222 = vector.broadcast %221 : vector<1x128xf32> to vector<8x128xf32>
      %223 = arith.addf %220, %222 : vector<8x128xf32>
      %cst_127 = arith.constant 0.176776692 : f32
      %224 = vector.broadcast %cst_127 : f32 to vector<8x128xf32>
      %225 = arith.mulf %223, %224 : vector<8x128xf32>
      %226 = vector.extract_strided_slice %225 {offsets = [0, 0], sizes = [8, 32], strides = [1, 1]} : vector<8x128xf32> to vector<8x32xf32>
      %227 = arith.truncf %226 : vector<8x32xf32> to vector<8x32xbf16>
      %c0_128 = arith.constant 0 : index
      %c0_129 = arith.constant 0 : index
      %c0_130 = arith.constant 0 : index
      %228 = vector.load %arg14[%c0_128, %c0_129, %c0_130] : memref<4x8x32xbf16, #tpu.memory_space<vmem>>, vector<1x8x32xbf16>
      %229 = vector.shape_cast %228 : vector<1x8x32xbf16> to vector<8x32xbf16>
      %230 = vector.shape_cast %227 : vector<8x32xbf16> to vector<1x8x32xbf16>
      tpu.vector_store %arg14[%c0_128, %c0_129, %c0_130], %230 {strides = array<i32>} : memref<4x8x32xbf16, #tpu.memory_space<vmem>>, vector<1x8x32xbf16>,
      %231 = vector.extract_strided_slice %225 {offsets = [0, 32], sizes = [8, 32], strides = [1, 1]} : vector<8x128xf32> to vector<8x32xf32>
      %232 = arith.truncf %231 : vector<8x32xf32> to vector<8x32xbf16>
      %c1_131 = arith.constant 1 : index
      %c0_132 = arith.constant 0 : index
      %c0_133 = arith.constant 0 : index
      %233 = vector.load %arg14[%c1_131, %c0_132, %c0_133] : memref<4x8x32xbf16, #tpu.memory_space<vmem>>, vector<1x8x32xbf16>
      %234 = vector.shape_cast %233 : vector<1x8x32xbf16> to vector<8x32xbf16>
      %235 = vector.shape_cast %232 : vector<8x32xbf16> to vector<1x8x32xbf16>
      tpu.vector_store %arg14[%c1_131, %c0_132, %c0_133], %235 {strides = array<i32>} : memref<4x8x32xbf16, #tpu.memory_space<vmem>>, vector<1x8x32xbf16>,
      %236 = vector.extract_strided_slice %225 {offsets = [0, 64], sizes = [8, 32], strides = [1, 1]} : vector<8x128xf32> to vector<8x32xf32>
      %237 = arith.truncf %236 : vector<8x32xf32> to vector<8x32xbf16>
      %c2_134 = arith.constant 2 : index
      %c0_135 = arith.constant 0 : index
      %c0_136 = arith.constant 0 : index
      %238 = vector.load %arg14[%c2_134, %c0_135, %c0_136] : memref<4x8x32xbf16, #tpu.memory_space<vmem>>, vector<1x8x32xbf16>
      %239 = vector.shape_cast %238 : vector<1x8x32xbf16> to vector<8x32xbf16>
      %240 = vector.shape_cast %237 : vector<8x32xbf16> to vector<1x8x32xbf16>
      tpu.vector_store %arg14[%c2_134, %c0_135, %c0_136], %240 {strides = array<i32>} : memref<4x8x32xbf16, #tpu.memory_space<vmem>>, vector<1x8x32xbf16>,
      %241 = vector.extract_strided_slice %225 {offsets = [0, 96], sizes = [8, 32], strides = [1, 1]} : vector<8x128xf32> to vector<8x32xf32>
      %242 = arith.truncf %241 : vector<8x32xf32> to vector<8x32xbf16>
      %c3_137 = arith.constant 3 : index
      %c0_138 = arith.constant 0 : index
      %c0_139 = arith.constant 0 : index
      %243 = vector.load %arg14[%c3_137, %c0_138, %c0_139] : memref<4x8x32xbf16, #tpu.memory_space<vmem>>, vector<1x8x32xbf16>
      %244 = vector.shape_cast %243 : vector<1x8x32xbf16> to vector<8x32xbf16>
      %245 = vector.shape_cast %242 : vector<8x32xbf16> to vector<1x8x32xbf16>
      tpu.vector_store %arg14[%c3_137, %c0_138, %c0_139], %245 {strides = array<i32>} : memref<4x8x32xbf16, #tpu.memory_space<vmem>>, vector<1x8x32xbf16>,
      %cst_140 = arith.constant 0xFF800000 : f32
      %246 = vector.broadcast %cst_140 : f32 to vector<4x8x1xf32>
      %c0_141 = arith.constant 0 : index
      %c0_142 = arith.constant 0 : index
      %c0_143 = arith.constant 0 : index
      %247 = vector.load %arg15[%c0_141, %c0_142, %c0_143] : memref<4x8x1xf32, #tpu.memory_space<vmem>>, vector<4x8x1xf32>
      tpu.vector_store %arg15[%c0_141, %c0_142, %c0_143], %246 {strides = array<i32>} : memref<4x8x1xf32, #tpu.memory_space<vmem>>, vector<4x8x1xf32>,
      %cst_144 = arith.constant 0.000000e+00 : f32
      %248 = vector.broadcast %cst_144 : f32 to vector<4x8x1xf32>
      %c0_145 = arith.constant 0 : index
      %c0_146 = arith.constant 0 : index
      %c0_147 = arith.constant 0 : index
      %249 = vector.load %arg16[%c0_145, %c0_146, %c0_147] : memref<4x8x1xf32, #tpu.memory_space<vmem>>, vector<4x8x1xf32>
      tpu.vector_store %arg16[%c0_145, %c0_146, %c0_147], %248 {strides = array<i32>} : memref<4x8x1xf32, #tpu.memory_space<vmem>>, vector<4x8x1xf32>,
      %cst_148 = arith.constant 0.000000e+00 : f32
      %250 = vector.broadcast %cst_148 : f32 to vector<4x8x32xf32>
      %c0_149 = arith.constant 0 : index
      %c0_150 = arith.constant 0 : index
      %c0_151 = arith.constant 0 : index
      %251 = vector.load %arg17[%c0_149, %c0_150, %c0_151] : memref<4x8x32xf32, #tpu.memory_space<vmem>>, vector<4x8x32xf32>
      tpu.vector_store %arg17[%c0_149, %c0_150, %c0_151], %250 {strides = array<i32>} : memref<4x8x32xf32, #tpu.memory_space<vmem>>, vector<4x8x32xf32>,
    } else {
    }
    %c0_4 = arith.constant 0 : index
    %c0_5 = arith.constant 0 : index
    %c0_6 = arith.constant 0 : index
    %5 = vector.load %arg4[%c0_4, %c0_5, %c0_6] : memref<1x8x128xf32, #tpu.memory_space<vmem>>, vector<1x8x128xf32>
    %6 = vector.shape_cast %5 : vector<1x8x128xf32> to vector<8x128xf32>
    %cst = arith.constant dense<0.000000e+00> : vector<8xf32>
    %7 = vector.multi_reduction <add>, %6, %cst [1] : vector<8x128xf32> to vector<8xf32>
    %8 = vector.shape_cast %7 : vector<8xf32> to vector<8x1xf32>
    %cst_7 = arith.constant 1.280000e+02 : f32
    %9 = vector.broadcast %cst_7 : f32 to vector<8x1xf32>
    %10 = arith.divf %8, %9 : vector<8x1xf32>
    %11 = vector.broadcast %10 : vector<8x1xf32> to vector<8x128xf32>
    %12 = arith.subf %6, %11 : vector<8x128xf32>
    %13 = arith.mulf %12, %12 : vector<8x128xf32>
    %cst_8 = arith.constant dense<0.000000e+00> : vector<8xf32>
    %14 = vector.multi_reduction <add>, %13, %cst_8 [1] : vector<8x128xf32> to vector<8xf32>
    %15 = vector.shape_cast %14 : vector<8xf32> to vector<8x1xf32>
    %cst_9 = arith.constant 1.280000e+02 : f32
    %16 = vector.broadcast %cst_9 : f32 to vector<8x1xf32>
    %17 = arith.divf %15, %16 : vector<8x1xf32>
    %18 = vector.broadcast %10 : vector<8x1xf32> to vector<8x128xf32>
    %19 = arith.subf %6, %18 : vector<8x128xf32>
    %cst_10 = arith.constant 9.99999974E-6 : f32
    %20 = vector.broadcast %cst_10 : f32 to vector<8x1xf32>
    %21 = arith.addf %17, %20 : vector<8x1xf32>
    %22 = math.rsqrt %21 : vector<8x1xf32>
    %23 = vector.broadcast %22 : vector<8x1xf32> to vector<8x128xf32>
    %24 = arith.mulf %19, %23 : vector<8x128xf32>
    %25 = vector.broadcast %0 : vector<1x128xf32> to vector<8x128xf32>
    %26 = arith.mulf %24, %25 : vector<8x128xf32>
    %27 = vector.broadcast %1 : vector<1x128xf32> to vector<8x128xf32>
    %28 = arith.addf %26, %27 : vector<8x128xf32>
    %29 = arith.truncf %28 : vector<8x128xf32> to vector<8x128xbf16>
    %c0_11 = arith.constant 0 : index
    %c0_12 = arith.constant 0 : index
    %30 = vector.load %arg9[%c0_11, %c0_12] : memref<128x256xbf16, #tpu.memory_space<vmem>>, vector<128x256xbf16>
    %cst_13 = arith.constant dense<0.000000e+00> : vector<8x256xf32>
    %31 = tpu.matmul %29, %30, %cst_13 {dimension_numbers = #tpu.dot_dimension_numbers<[1], [0], [0], [1], [0, 0, 1, 1], [], []>} : vector<8x128xbf16>, vector<128x256xbf16>, vector<8x256xf32> -> vector<8x256xf32>
    %c0_14 = arith.constant 0 : index
    %c0_15 = arith.constant 0 : index
    %32 = vector.load %arg10[%c0_14, %c0_15] : memref<1x256xf32, #tpu.memory_space<vmem>>, vector<1x256xf32>
    %33 = vector.broadcast %32 : vector<1x256xf32> to vector<8x256xf32>
    %34 = arith.addf %31, %33 : vector<8x256xf32>
    %35 = vector.extract_strided_slice %34 {offsets = [0, 0], sizes = [8, 32], strides = [1, 1]} : vector<8x256xf32> to vector<8x32xf32>
    %36 = arith.truncf %35 : vector<8x32xf32> to vector<8x32xbf16>
    %37 = vector.extract_strided_slice %34 {offsets = [0, 128], sizes = [8, 32], strides = [1, 1]} : vector<8x256xf32> to vector<8x32xf32>
    %38 = arith.truncf %37 : vector<8x32xf32> to vector<8x32xbf16>
    %c0_16 = arith.constant 0 : index
    %c0_17 = arith.constant 0 : index
    %c0_18 = arith.constant 0 : index
    %39 = vector.load %arg14[%c0_16, %c0_17, %c0_18] : memref<4x8x32xbf16, #tpu.memory_space<vmem>>, vector<1x8x32xbf16>
    %40 = vector.shape_cast %39 : vector<1x8x32xbf16> to vector<8x32xbf16>
    %cst_19 = arith.constant dense<0.000000e+00> : vector<8x8xf32>
    %41 = tpu.matmul %40, %36, %cst_19 {dimension_numbers = #tpu.dot_dimension_numbers<[1], [1], [0], [0], [0, 0, 1, 0], [], []>} : vector<8x32xbf16>, vector<8x32xbf16>, vector<8x8xf32> -> vector<8x8xf32>
    %c0_20 = arith.constant 0 : index
    %c0_21 = arith.constant 0 : index
    %c0_22 = arith.constant 0 : index
    %42 = vector.load %arg15[%c0_20, %c0_21, %c0_22] : memref<4x8x1xf32, #tpu.memory_space<vmem>>, vector<1x8x1xf32>
    %43 = vector.shape_cast %42 : vector<1x8x1xf32> to vector<8x1xf32>
    %cst_23 = arith.constant dense<0xFF800000> : vector<8xf32>
    %44 = vector.multi_reduction <maximumf>, %41, %cst_23 [1] : vector<8x8xf32> to vector<8xf32>
    %45 = vector.shape_cast %44 : vector<8xf32> to vector<8x1xf32>
    %46 = arith.maximumf %43, %45 : vector<8x1xf32>
    %47 = arith.subf %43, %46 : vector<8x1xf32>
    %48 = math.exp %47 : vector<8x1xf32>
    %49 = vector.broadcast %46 : vector<8x1xf32> to vector<8x8xf32>
    %50 = arith.subf %41, %49 : vector<8x8xf32>
    %51 = math.exp %50 : vector<8x8xf32>
    %c0_24 = arith.constant 0 : index
    %c0_25 = arith.constant 0 : index
    %c0_26 = arith.constant 0 : index
    %52 = vector.load %arg16[%c0_24, %c0_25, %c0_26] : memref<4x8x1xf32, #tpu.memory_space<vmem>>, vector<1x8x1xf32>
    %53 = vector.shape_cast %52 : vector<1x8x1xf32> to vector<8x1xf32>
    %54 = arith.mulf %48, %53 : vector<8x1xf32>
    %cst_27 = arith.constant dense<0.000000e+00> : vector<8xf32>
    %55 = vector.multi_reduction <add>, %51, %cst_27 [1] : vector<8x8xf32> to vector<8xf32>
    %56 = vector.shape_cast %55 : vector<8xf32> to vector<8x1xf32>
    %57 = arith.addf %54, %56 : vector<8x1xf32>
    %c0_28 = arith.constant 0 : index
    %c0_29 = arith.constant 0 : index
    %c0_30 = arith.constant 0 : index
    %58 = vector.load %arg16[%c0_28, %c0_29, %c0_30] : memref<4x8x1xf32, #tpu.memory_space<vmem>>, vector<1x8x1xf32>
    %59 = vector.shape_cast %58 : vector<1x8x1xf32> to vector<8x1xf32>
    %60 = vector.shape_cast %57 : vector<8x1xf32> to vector<1x8x1xf32>
    tpu.vector_store %arg16[%c0_28, %c0_29, %c0_30], %60 {strides = array<i32>} : memref<4x8x1xf32, #tpu.memory_space<vmem>>, vector<1x8x1xf32>,
    %c0_31 = arith.constant 0 : index
    %c0_32 = arith.constant 0 : index
    %c0_33 = arith.constant 0 : index
    %61 = vector.load %arg17[%c0_31, %c0_32, %c0_33] : memref<4x8x32xf32, #tpu.memory_space<vmem>>, vector<1x8x32xf32>
    %62 = vector.shape_cast %61 : vector<1x8x32xf32> to vector<8x32xf32>
    %63 = vector.broadcast %48 : vector<8x1xf32> to vector<8x32xf32>
    %64 = arith.mulf %63, %62 : vector<8x32xf32>
    %65 = arith.truncf %51 : vector<8x8xf32> to vector<8x8xbf16>
    %cst_34 = arith.constant dense<0.000000e+00> : vector<8x32xf32>
    %66 = tpu.matmul %65, %38, %cst_34 {dimension_numbers = #tpu.dot_dimension_numbers<[1], [0], [0], [1], [0, 0, 1, 1], [], []>} : vector<8x8xbf16>, vector<8x32xbf16>, vector<8x32xf32> -> vector<8x32xf32>
    %67 = arith.addf %64, %66 : vector<8x32xf32>
    %c0_35 = arith.constant 0 : index
    %c0_36 = arith.constant 0 : index
    %c0_37 = arith.constant 0 : index
    %68 = vector.load %arg17[%c0_35, %c0_36, %c0_37] : memref<4x8x32xf32, #tpu.memory_space<vmem>>, vector<1x8x32xf32>
    %69 = vector.shape_cast %68 : vector<1x8x32xf32> to vector<8x32xf32>
    %70 = vector.shape_cast %67 : vector<8x32xf32> to vector<1x8x32xf32>
    tpu.vector_store %arg17[%c0_35, %c0_36, %c0_37], %70 {strides = array<i32>} : memref<4x8x32xf32, #tpu.memory_space<vmem>>, vector<1x8x32xf32>,
    %c0_38 = arith.constant 0 : index
    %c0_39 = arith.constant 0 : index
    %c0_40 = arith.constant 0 : index
    %71 = vector.load %arg15[%c0_38, %c0_39, %c0_40] : memref<4x8x1xf32, #tpu.memory_space<vmem>>, vector<1x8x1xf32>
    %72 = vector.shape_cast %71 : vector<1x8x1xf32> to vector<8x1xf32>
    %73 = vector.shape_cast %46 : vector<8x1xf32> to vector<1x8x1xf32>
    tpu.vector_store %arg15[%c0_38, %c0_39, %c0_40], %73 {strides = array<i32>} : memref<4x8x1xf32, #tpu.memory_space<vmem>>, vector<1x8x1xf32>,
    %74 = vector.extract_strided_slice %34 {offsets = [0, 32], sizes = [8, 32], strides = [1, 1]} : vector<8x256xf32> to vector<8x32xf32>
    %75 = arith.truncf %74 : vector<8x32xf32> to vector<8x32xbf16>
    %76 = vector.extract_strided_slice %34 {offsets = [0, 160], sizes = [8, 32], strides = [1, 1]} : vector<8x256xf32> to vector<8x32xf32>
    %77 = arith.truncf %76 : vector<8x32xf32> to vector<8x32xbf16>
    %c1 = arith.constant 1 : index
    %c0_41 = arith.constant 0 : index
    %c0_42 = arith.constant 0 : index
    %78 = vector.load %arg14[%c1, %c0_41, %c0_42] : memref<4x8x32xbf16, #tpu.memory_space<vmem>>, vector<1x8x32xbf16>
    %79 = vector.shape_cast %78 : vector<1x8x32xbf16> to vector<8x32xbf16>
    %cst_43 = arith.constant dense<0.000000e+00> : vector<8x8xf32>
    %80 = tpu.matmul %79, %75, %cst_43 {dimension_numbers = #tpu.dot_dimension_numbers<[1], [1], [0], [0], [0, 0, 1, 0], [], []>} : vector<8x32xbf16>, vector<8x32xbf16>, vector<8x8xf32> -> vector<8x8xf32>
    %c1_44 = arith.constant 1 : index
    %c0_45 = arith.constant 0 : index
    %c0_46 = arith.constant 0 : index
    %81 = vector.load %arg15[%c1_44, %c0_45, %c0_46] : memref<4x8x1xf32, #tpu.memory_space<vmem>>, vector<1x8x1xf32>
    %82 = vector.shape_cast %81 : vector<1x8x1xf32> to vector<8x1xf32>
    %cst_47 = arith.constant dense<0xFF800000> : vector<8xf32>
    %83 = vector.multi_reduction <maximumf>, %80, %cst_47 [1] : vector<8x8xf32> to vector<8xf32>
    %84 = vector.shape_cast %83 : vector<8xf32> to vector<8x1xf32>
    %85 = arith.maximumf %82, %84 : vector<8x1xf32>
    %86 = arith.subf %82, %85 : vector<8x1xf32>
    %87 = math.exp %86 : vector<8x1xf32>
    %88 = vector.broadcast %85 : vector<8x1xf32> to vector<8x8xf32>
    %89 = arith.subf %80, %88 : vector<8x8xf32>
    %90 = math.exp %89 : vector<8x8xf32>
    %c1_48 = arith.constant 1 : index
    %c0_49 = arith.constant 0 : index
    %c0_50 = arith.constant 0 : index
    %91 = vector.load %arg16[%c1_48, %c0_49, %c0_50] : memref<4x8x1xf32, #tpu.memory_space<vmem>>, vector<1x8x1xf32>
    %92 = vector.shape_cast %91 : vector<1x8x1xf32> to vector<8x1xf32>
    %93 = arith.mulf %87, %92 : vector<8x1xf32>
    %cst_51 = arith.constant dense<0.000000e+00> : vector<8xf32>
    %94 = vector.multi_reduction <add>, %90, %cst_51 [1] : vector<8x8xf32> to vector<8xf32>
    %95 = vector.shape_cast %94 : vector<8xf32> to vector<8x1xf32>
    %96 = arith.addf %93, %95 : vector<8x1xf32>
    %c1_52 = arith.constant 1 : index
    %c0_53 = arith.constant 0 : index
    %c0_54 = arith.constant 0 : index
    %97 = vector.load %arg16[%c1_52, %c0_53, %c0_54] : memref<4x8x1xf32, #tpu.memory_space<vmem>>, vector<1x8x1xf32>
    %98 = vector.shape_cast %97 : vector<1x8x1xf32> to vector<8x1xf32>
    %99 = vector.shape_cast %96 : vector<8x1xf32> to vector<1x8x1xf32>
    tpu.vector_store %arg16[%c1_52, %c0_53, %c0_54], %99 {strides = array<i32>} : memref<4x8x1xf32, #tpu.memory_space<vmem>>, vector<1x8x1xf32>,
    %c1_55 = arith.constant 1 : index
    %c0_56 = arith.constant 0 : index
    %c0_57 = arith.constant 0 : index
    %100 = vector.load %arg17[%c1_55, %c0_56, %c0_57] : memref<4x8x32xf32, #tpu.memory_space<vmem>>, vector<1x8x32xf32>
    %101 = vector.shape_cast %100 : vector<1x8x32xf32> to vector<8x32xf32>
    %102 = vector.broadcast %87 : vector<8x1xf32> to vector<8x32xf32>
    %103 = arith.mulf %102, %101 : vector<8x32xf32>
    %104 = arith.truncf %90 : vector<8x8xf32> to vector<8x8xbf16>
    %cst_58 = arith.constant dense<0.000000e+00> : vector<8x32xf32>
    %105 = tpu.matmul %104, %77, %cst_58 {dimension_numbers = #tpu.dot_dimension_numbers<[1], [0], [0], [1], [0, 0, 1, 1], [], []>} : vector<8x8xbf16>, vector<8x32xbf16>, vector<8x32xf32> -> vector<8x32xf32>
    %106 = arith.addf %103, %105 : vector<8x32xf32>
    %c1_59 = arith.constant 1 : index
    %c0_60 = arith.constant 0 : index
    %c0_61 = arith.constant 0 : index
    %107 = vector.load %arg17[%c1_59, %c0_60, %c0_61] : memref<4x8x32xf32, #tpu.memory_space<vmem>>, vector<1x8x32xf32>
    %108 = vector.shape_cast %107 : vector<1x8x32xf32> to vector<8x32xf32>
    %109 = vector.shape_cast %106 : vector<8x32xf32> to vector<1x8x32xf32>
    tpu.vector_store %arg17[%c1_59, %c0_60, %c0_61], %109 {strides = array<i32>} : memref<4x8x32xf32, #tpu.memory_space<vmem>>, vector<1x8x32xf32>,
    %c1_62 = arith.constant 1 : index
    %c0_63 = arith.constant 0 : index
    %c0_64 = arith.constant 0 : index
    %110 = vector.load %arg15[%c1_62, %c0_63, %c0_64] : memref<4x8x1xf32, #tpu.memory_space<vmem>>, vector<1x8x1xf32>
    %111 = vector.shape_cast %110 : vector<1x8x1xf32> to vector<8x1xf32>
    %112 = vector.shape_cast %85 : vector<8x1xf32> to vector<1x8x1xf32>
    tpu.vector_store %arg15[%c1_62, %c0_63, %c0_64], %112 {strides = array<i32>} : memref<4x8x1xf32, #tpu.memory_space<vmem>>, vector<1x8x1xf32>,
    %113 = vector.extract_strided_slice %34 {offsets = [0, 64], sizes = [8, 32], strides = [1, 1]} : vector<8x256xf32> to vector<8x32xf32>
    %114 = arith.truncf %113 : vector<8x32xf32> to vector<8x32xbf16>
    %115 = vector.extract_strided_slice %34 {offsets = [0, 192], sizes = [8, 32], strides = [1, 1]} : vector<8x256xf32> to vector<8x32xf32>
    %116 = arith.truncf %115 : vector<8x32xf32> to vector<8x32xbf16>
    %c2 = arith.constant 2 : index
    %c0_65 = arith.constant 0 : index
    %c0_66 = arith.constant 0 : index
    %117 = vector.load %arg14[%c2, %c0_65, %c0_66] : memref<4x8x32xbf16, #tpu.memory_space<vmem>>, vector<1x8x32xbf16>
    %118 = vector.shape_cast %117 : vector<1x8x32xbf16> to vector<8x32xbf16>
    %cst_67 = arith.constant dense<0.000000e+00> : vector<8x8xf32>
    %119 = tpu.matmul %118, %114, %cst_67 {dimension_numbers = #tpu.dot_dimension_numbers<[1], [1], [0], [0], [0, 0, 1, 0], [], []>} : vector<8x32xbf16>, vector<8x32xbf16>, vector<8x8xf32> -> vector<8x8xf32>
    %c2_68 = arith.constant 2 : index
    %c0_69 = arith.constant 0 : index
    %c0_70 = arith.constant 0 : index
    %120 = vector.load %arg15[%c2_68, %c0_69, %c0_70] : memref<4x8x1xf32, #tpu.memory_space<vmem>>, vector<1x8x1xf32>
    %121 = vector.shape_cast %120 : vector<1x8x1xf32> to vector<8x1xf32>
    %cst_71 = arith.constant dense<0xFF800000> : vector<8xf32>
    %122 = vector.multi_reduction <maximumf>, %119, %cst_71 [1] : vector<8x8xf32> to vector<8xf32>
    %123 = vector.shape_cast %122 : vector<8xf32> to vector<8x1xf32>
    %124 = arith.maximumf %121, %123 : vector<8x1xf32>
    %125 = arith.subf %121, %124 : vector<8x1xf32>
    %126 = math.exp %125 : vector<8x1xf32>
    %127 = vector.broadcast %124 : vector<8x1xf32> to vector<8x8xf32>
    %128 = arith.subf %119, %127 : vector<8x8xf32>
    %129 = math.exp %128 : vector<8x8xf32>
    %c2_72 = arith.constant 2 : index
    %c0_73 = arith.constant 0 : index
    %c0_74 = arith.constant 0 : index
    %130 = vector.load %arg16[%c2_72, %c0_73, %c0_74] : memref<4x8x1xf32, #tpu.memory_space<vmem>>, vector<1x8x1xf32>
    %131 = vector.shape_cast %130 : vector<1x8x1xf32> to vector<8x1xf32>
    %132 = arith.mulf %126, %131 : vector<8x1xf32>
    %cst_75 = arith.constant dense<0.000000e+00> : vector<8xf32>
    %133 = vector.multi_reduction <add>, %129, %cst_75 [1] : vector<8x8xf32> to vector<8xf32>
    %134 = vector.shape_cast %133 : vector<8xf32> to vector<8x1xf32>
    %135 = arith.addf %132, %134 : vector<8x1xf32>
    %c2_76 = arith.constant 2 : index
    %c0_77 = arith.constant 0 : index
    %c0_78 = arith.constant 0 : index
    %136 = vector.load %arg16[%c2_76, %c0_77, %c0_78] : memref<4x8x1xf32, #tpu.memory_space<vmem>>, vector<1x8x1xf32>
    %137 = vector.shape_cast %136 : vector<1x8x1xf32> to vector<8x1xf32>
    %138 = vector.shape_cast %135 : vector<8x1xf32> to vector<1x8x1xf32>
    tpu.vector_store %arg16[%c2_76, %c0_77, %c0_78], %138 {strides = array<i32>} : memref<4x8x1xf32, #tpu.memory_space<vmem>>, vector<1x8x1xf32>,
    %c2_79 = arith.constant 2 : index
    %c0_80 = arith.constant 0 : index
    %c0_81 = arith.constant 0 : index
    %139 = vector.load %arg17[%c2_79, %c0_80, %c0_81] : memref<4x8x32xf32, #tpu.memory_space<vmem>>, vector<1x8x32xf32>
    %140 = vector.shape_cast %139 : vector<1x8x32xf32> to vector<8x32xf32>
    %141 = vector.broadcast %126 : vector<8x1xf32> to vector<8x32xf32>
    %142 = arith.mulf %141, %140 : vector<8x32xf32>
    %143 = arith.truncf %129 : vector<8x8xf32> to vector<8x8xbf16>
    %cst_82 = arith.constant dense<0.000000e+00> : vector<8x32xf32>
    %144 = tpu.matmul %143, %116, %cst_82 {dimension_numbers = #tpu.dot_dimension_numbers<[1], [0], [0], [1], [0, 0, 1, 1], [], []>} : vector<8x8xbf16>, vector<8x32xbf16>, vector<8x32xf32> -> vector<8x32xf32>
    %145 = arith.addf %142, %144 : vector<8x32xf32>
    %c2_83 = arith.constant 2 : index
    %c0_84 = arith.constant 0 : index
    %c0_85 = arith.constant 0 : index
    %146 = vector.load %arg17[%c2_83, %c0_84, %c0_85] : memref<4x8x32xf32, #tpu.memory_space<vmem>>, vector<1x8x32xf32>
    %147 = vector.shape_cast %146 : vector<1x8x32xf32> to vector<8x32xf32>
    %148 = vector.shape_cast %145 : vector<8x32xf32> to vector<1x8x32xf32>
    tpu.vector_store %arg17[%c2_83, %c0_84, %c0_85], %148 {strides = array<i32>} : memref<4x8x32xf32, #tpu.memory_space<vmem>>, vector<1x8x32xf32>,
    %c2_86 = arith.constant 2 : index
    %c0_87 = arith.constant 0 : index
    %c0_88 = arith.constant 0 : index
    %149 = vector.load %arg15[%c2_86, %c0_87, %c0_88] : memref<4x8x1xf32, #tpu.memory_space<vmem>>, vector<1x8x1xf32>
    %150 = vector.shape_cast %149 : vector<1x8x1xf32> to vector<8x1xf32>
    %151 = vector.shape_cast %124 : vector<8x1xf32> to vector<1x8x1xf32>
    tpu.vector_store %arg15[%c2_86, %c0_87, %c0_88], %151 {strides = array<i32>} : memref<4x8x1xf32, #tpu.memory_space<vmem>>, vector<1x8x1xf32>,
    %152 = vector.extract_strided_slice %34 {offsets = [0, 96], sizes = [8, 32], strides = [1, 1]} : vector<8x256xf32> to vector<8x32xf32>
    %153 = arith.truncf %152 : vector<8x32xf32> to vector<8x32xbf16>
    %154 = vector.extract_strided_slice %34 {offsets = [0, 224], sizes = [8, 32], strides = [1, 1]} : vector<8x256xf32> to vector<8x32xf32>
    %155 = arith.truncf %154 : vector<8x32xf32> to vector<8x32xbf16>
    %c3 = arith.constant 3 : index
    %c0_89 = arith.constant 0 : index
    %c0_90 = arith.constant 0 : index
    %156 = vector.load %arg14[%c3, %c0_89, %c0_90] : memref<4x8x32xbf16, #tpu.memory_space<vmem>>, vector<1x8x32xbf16>
    %157 = vector.shape_cast %156 : vector<1x8x32xbf16> to vector<8x32xbf16>
    %cst_91 = arith.constant dense<0.000000e+00> : vector<8x8xf32>
    %158 = tpu.matmul %157, %153, %cst_91 {dimension_numbers = #tpu.dot_dimension_numbers<[1], [1], [0], [0], [0, 0, 1, 0], [], []>} : vector<8x32xbf16>, vector<8x32xbf16>, vector<8x8xf32> -> vector<8x8xf32>
    %c3_92 = arith.constant 3 : index
    %c0_93 = arith.constant 0 : index
    %c0_94 = arith.constant 0 : index
    %159 = vector.load %arg15[%c3_92, %c0_93, %c0_94] : memref<4x8x1xf32, #tpu.memory_space<vmem>>, vector<1x8x1xf32>
    %160 = vector.shape_cast %159 : vector<1x8x1xf32> to vector<8x1xf32>
    %cst_95 = arith.constant dense<0xFF800000> : vector<8xf32>
    %161 = vector.multi_reduction <maximumf>, %158, %cst_95 [1] : vector<8x8xf32> to vector<8xf32>
    %162 = vector.shape_cast %161 : vector<8xf32> to vector<8x1xf32>
    %163 = arith.maximumf %160, %162 : vector<8x1xf32>
    %164 = arith.subf %160, %163 : vector<8x1xf32>
    %165 = math.exp %164 : vector<8x1xf32>
    %166 = vector.broadcast %163 : vector<8x1xf32> to vector<8x8xf32>
    %167 = arith.subf %158, %166 : vector<8x8xf32>
    %168 = math.exp %167 : vector<8x8xf32>
    %c3_96 = arith.constant 3 : index
    %c0_97 = arith.constant 0 : index
    %c0_98 = arith.constant 0 : index
    %169 = vector.load %arg16[%c3_96, %c0_97, %c0_98] : memref<4x8x1xf32, #tpu.memory_space<vmem>>, vector<1x8x1xf32>
    %170 = vector.shape_cast %169 : vector<1x8x1xf32> to vector<8x1xf32>
    %171 = arith.mulf %165, %170 : vector<8x1xf32>
    %cst_99 = arith.constant dense<0.000000e+00> : vector<8xf32>
    %172 = vector.multi_reduction <add>, %168, %cst_99 [1] : vector<8x8xf32> to vector<8xf32>
    %173 = vector.shape_cast %172 : vector<8xf32> to vector<8x1xf32>
    %174 = arith.addf %171, %173 : vector<8x1xf32>
    %c3_100 = arith.constant 3 : index
    %c0_101 = arith.constant 0 : index
    %c0_102 = arith.constant 0 : index
    %175 = vector.load %arg16[%c3_100, %c0_101, %c0_102] : memref<4x8x1xf32, #tpu.memory_space<vmem>>, vector<1x8x1xf32>
    %176 = vector.shape_cast %175 : vector<1x8x1xf32> to vector<8x1xf32>
    %177 = vector.shape_cast %174 : vector<8x1xf32> to vector<1x8x1xf32>
    tpu.vector_store %arg16[%c3_100, %c0_101, %c0_102], %177 {strides = array<i32>} : memref<4x8x1xf32, #tpu.memory_space<vmem>>, vector<1x8x1xf32>,
    %c3_103 = arith.constant 3 : index
    %c0_104 = arith.constant 0 : index
    %c0_105 = arith.constant 0 : index
    %178 = vector.load %arg17[%c3_103, %c0_104, %c0_105] : memref<4x8x32xf32, #tpu.memory_space<vmem>>, vector<1x8x32xf32>
    %179 = vector.shape_cast %178 : vector<1x8x32xf32> to vector<8x32xf32>
    %180 = vector.broadcast %165 : vector<8x1xf32> to vector<8x32xf32>
    %181 = arith.mulf %180, %179 : vector<8x32xf32>
    %182 = arith.truncf %168 : vector<8x8xf32> to vector<8x8xbf16>
    %cst_106 = arith.constant dense<0.000000e+00> : vector<8x32xf32>
    %183 = tpu.matmul %182, %155, %cst_106 {dimension_numbers = #tpu.dot_dimension_numbers<[1], [0], [0], [1], [0, 0, 1, 1], [], []>} : vector<8x8xbf16>, vector<8x32xbf16>, vector<8x32xf32> -> vector<8x32xf32>
    %184 = arith.addf %181, %183 : vector<8x32xf32>
    %c3_107 = arith.constant 3 : index
    %c0_108 = arith.constant 0 : index
    %c0_109 = arith.constant 0 : index
    %185 = vector.load %arg17[%c3_107, %c0_108, %c0_109] : memref<4x8x32xf32, #tpu.memory_space<vmem>>, vector<1x8x32xf32>
    %186 = vector.shape_cast %185 : vector<1x8x32xf32> to vector<8x32xf32>
    %187 = vector.shape_cast %184 : vector<8x32xf32> to vector<1x8x32xf32>
    tpu.vector_store %arg17[%c3_107, %c0_108, %c0_109], %187 {strides = array<i32>} : memref<4x8x32xf32, #tpu.memory_space<vmem>>, vector<1x8x32xf32>,
    %c3_110 = arith.constant 3 : index
    %c0_111 = arith.constant 0 : index
    %c0_112 = arith.constant 0 : index
    %188 = vector.load %arg15[%c3_110, %c0_111, %c0_112] : memref<4x8x1xf32, #tpu.memory_space<vmem>>, vector<1x8x1xf32>
    %189 = vector.shape_cast %188 : vector<1x8x1xf32> to vector<8x1xf32>
    %190 = vector.shape_cast %163 : vector<8x1xf32> to vector<1x8x1xf32>
    tpu.vector_store %arg15[%c3_110, %c0_111, %c0_112], %190 {strides = array<i32>} : memref<4x8x1xf32, #tpu.memory_space<vmem>>, vector<1x8x1xf32>,
    %c1_i32 = arith.constant 1 : i32
    %191 = arith.cmpi eq, %arg2, %c1_i32 : i32
    %192 = arith.extui %191 : i1 to i32
    %c0_i32_113 = arith.constant 0 : i32
    %193 = arith.cmpi ne, %192, %c0_i32_113 : i32
    scf.if %193 {
      %c0_114 = arith.constant 0 : index
      %c0_115 = arith.constant 0 : index
      %c0_116 = arith.constant 0 : index
      %194 = vector.load %arg16[%c0_114, %c0_115, %c0_116] : memref<4x8x1xf32, #tpu.memory_space<vmem>>, vector<1x8x1xf32>
      %195 = vector.shape_cast %194 : vector<1x8x1xf32> to vector<8x1xf32>
      %196 = tpu.reciprocal %195 {approx = true} : vector<8x1xf32> -> vector<8x1xf32>
      %c0_117 = arith.constant 0 : index
      %c0_118 = arith.constant 0 : index
      %c0_119 = arith.constant 0 : index
      %197 = vector.load %arg17[%c0_117, %c0_118, %c0_119] : memref<4x8x32xf32, #tpu.memory_space<vmem>>, vector<1x8x32xf32>
      %198 = vector.shape_cast %197 : vector<1x8x32xf32> to vector<8x32xf32>
      %199 = vector.broadcast %196 : vector<8x1xf32> to vector<8x32xf32>
      %200 = arith.mulf %198, %199 : vector<8x32xf32>
      %c0_120 = arith.constant 0 : index
      %c0_121 = arith.constant 0 : index
      %201 = vector.load %arg18[%c0_120, %c0_121] : memref<8x128xf32, #tpu.memory_space<vmem>>, vector<8x32xf32>
      tpu.vector_store %arg18[%c0_120, %c0_121], %200 {strides = array<i32>} : memref<8x128xf32, #tpu.memory_space<vmem>>, vector<8x32xf32>,
      %c1_122 = arith.constant 1 : index
      %c0_123 = arith.constant 0 : index
      %c0_124 = arith.constant 0 : index
      %202 = vector.load %arg16[%c1_122, %c0_123, %c0_124] : memref<4x8x1xf32, #tpu.memory_space<vmem>>, vector<1x8x1xf32>
      %203 = vector.shape_cast %202 : vector<1x8x1xf32> to vector<8x1xf32>
      %204 = tpu.reciprocal %203 {approx = true} : vector<8x1xf32> -> vector<8x1xf32>
      %c1_125 = arith.constant 1 : index
      %c0_126 = arith.constant 0 : index
      %c0_127 = arith.constant 0 : index
      %205 = vector.load %arg17[%c1_125, %c0_126, %c0_127] : memref<4x8x32xf32, #tpu.memory_space<vmem>>, vector<1x8x32xf32>
      %206 = vector.shape_cast %205 : vector<1x8x32xf32> to vector<8x32xf32>
      %207 = vector.broadcast %204 : vector<8x1xf32> to vector<8x32xf32>
      %208 = arith.mulf %206, %207 : vector<8x32xf32>
      %c0_128 = arith.constant 0 : index
      %c32 = arith.constant 32 : index
      %209 = vector.load %arg18[%c0_128, %c32] : memref<8x128xf32, #tpu.memory_space<vmem>>, vector<8x32xf32>
      tpu.vector_store %arg18[%c0_128, %c32], %208 {strides = array<i32>} : memref<8x128xf32, #tpu.memory_space<vmem>>, vector<8x32xf32>,
      %c2_129 = arith.constant 2 : index
      %c0_130 = arith.constant 0 : index
      %c0_131 = arith.constant 0 : index
      %210 = vector.load %arg16[%c2_129, %c0_130, %c0_131] : memref<4x8x1xf32, #tpu.memory_space<vmem>>, vector<1x8x1xf32>
      %211 = vector.shape_cast %210 : vector<1x8x1xf32> to vector<8x1xf32>
      %212 = tpu.reciprocal %211 {approx = true} : vector<8x1xf32> -> vector<8x1xf32>
      %c2_132 = arith.constant 2 : index
      %c0_133 = arith.constant 0 : index
      %c0_134 = arith.constant 0 : index
      %213 = vector.load %arg17[%c2_132, %c0_133, %c0_134] : memref<4x8x32xf32, #tpu.memory_space<vmem>>, vector<1x8x32xf32>
      %214 = vector.shape_cast %213 : vector<1x8x32xf32> to vector<8x32xf32>
      %215 = vector.broadcast %212 : vector<8x1xf32> to vector<8x32xf32>
      %216 = arith.mulf %214, %215 : vector<8x32xf32>
      %c0_135 = arith.constant 0 : index
      %c64 = arith.constant 64 : index
      %217 = vector.load %arg18[%c0_135, %c64] : memref<8x128xf32, #tpu.memory_space<vmem>>, vector<8x32xf32>
      tpu.vector_store %arg18[%c0_135, %c64], %216 {strides = array<i32>} : memref<8x128xf32, #tpu.memory_space<vmem>>, vector<8x32xf32>,
      %c3_136 = arith.constant 3 : index
      %c0_137 = arith.constant 0 : index
      %c0_138 = arith.constant 0 : index
      %218 = vector.load %arg16[%c3_136, %c0_137, %c0_138] : memref<4x8x1xf32, #tpu.memory_space<vmem>>, vector<1x8x1xf32>
      %219 = vector.shape_cast %218 : vector<1x8x1xf32> to vector<8x1xf32>
      %220 = tpu.reciprocal %219 {approx = true} : vector<8x1xf32> -> vector<8x1xf32>
      %c3_139 = arith.constant 3 : index
      %c0_140 = arith.constant 0 : index
      %c0_141 = arith.constant 0 : index
      %221 = vector.load %arg17[%c3_139, %c0_140, %c0_141] : memref<4x8x32xf32, #tpu.memory_space<vmem>>, vector<1x8x32xf32>
      %222 = vector.shape_cast %221 : vector<1x8x32xf32> to vector<8x32xf32>
      %223 = vector.broadcast %220 : vector<8x1xf32> to vector<8x32xf32>
      %224 = arith.mulf %222, %223 : vector<8x32xf32>
      %c0_142 = arith.constant 0 : index
      %c96 = arith.constant 96 : index
      %225 = vector.load %arg18[%c0_142, %c96] : memref<8x128xf32, #tpu.memory_space<vmem>>, vector<8x32xf32>
      tpu.vector_store %arg18[%c0_142, %c96], %224 {strides = array<i32>} : memref<8x128xf32, #tpu.memory_space<vmem>>, vector<8x32xf32>,
      %c0_143 = arith.constant 0 : index
      %c0_144 = arith.constant 0 : index
      %226 = vector.load %arg18[%c0_143, %c0_144] : memref<8x128xf32, #tpu.memory_space<vmem>>, vector<8x128xf32>
      %227 = arith.truncf %226 : vector<8x128xf32> to vector<8x128xbf16>
      %c0_145 = arith.constant 0 : index
      %c0_146 = arith.constant 0 : index
      %228 = vector.load %arg11[%c0_145, %c0_146] : memref<128x128xbf16, #tpu.memory_space<vmem>>, vector<128x128xbf16>
      %cst_147 = arith.constant dense<0.000000e+00> : vector<8x128xf32>
      %229 = tpu.matmul %227, %228, %cst_147 {dimension_numbers = #tpu.dot_dimension_numbers<[1], [0], [0], [1], [0, 0, 1, 1], [], []>} : vector<8x128xbf16>, vector<128x128xbf16>, vector<8x128xf32> -> vector<8x128xf32>
      %c0_148 = arith.constant 0 : index
      %c0_149 = arith.constant 0 : index
      %230 = vector.load %arg12[%c0_148, %c0_149] : memref<1x128xf32, #tpu.memory_space<vmem>>, vector<1x128xf32>
      %231 = vector.broadcast %230 : vector<1x128xf32> to vector<8x128xf32>
      %232 = arith.addf %229, %231 : vector<8x128xf32>
      %c0_150 = arith.constant 0 : index
      %c0_151 = arith.constant 0 : index
      %c0_152 = arith.constant 0 : index
      %233 = vector.load %arg3[%c0_150, %c0_151, %c0_152] : memref<1x8x128xf32, #tpu.memory_space<vmem>>, vector<1x8x128xf32>
      %234 = vector.shape_cast %233 : vector<1x8x128xf32> to vector<8x128xf32>
      %235 = arith.addf %234, %232 : vector<8x128xf32>
      %c0_153 = arith.constant 0 : index
      %c0_154 = arith.constant 0 : index
      %c0_155 = arith.constant 0 : index
      %236 = vector.load %arg13[%c0_153, %c0_154, %c0_155] : memref<1x8x128xf32, #tpu.memory_space<vmem>>, vector<1x8x128xf32>
      %237 = vector.shape_cast %236 : vector<1x8x128xf32> to vector<8x128xf32>
      %238 = vector.shape_cast %235 : vector<8x128xf32> to vector<1x8x128xf32>
      tpu.vector_store %arg13[%c0_153, %c0_154, %c0_155], %238 {strides = array<i32>} : memref<1x8x128xf32, #tpu.memory_space<vmem>>, vector<1x8x128xf32>,
    } else {
    }
    return
  }
  func.func @transform_0(%arg0: i32, %arg1: i32, %arg2: i32) -> (i32, i32, i32) {
    %c0_i32 = arith.constant 0 : i32
    %c0_i32_0 = arith.constant 0 : i32
    return %arg0, %arg1, %c0_i32 : i32, i32, i32
  }
  func.func @transform_1(%arg0: i32, %arg1: i32, %arg2: i32) -> (i32, i32, i32) {
    %c0_i32 = arith.constant 0 : i32
    %c0_i32_0 = arith.constant 0 : i32
    return %arg0, %arg2, %c0_i32 : i32, i32, i32
  }
  func.func @transform_2(%arg0: i32, %arg1: i32, %arg2: i32) -> (i32, i32) {
    %c0_i32 = arith.constant 0 : i32
    %c0_i32_0 = arith.constant 0 : i32
    %c0_i32_1 = arith.constant 0 : i32
    return %c0_i32, %c0_i32_0 : i32, i32
  }
  func.func @transform_3(%arg0: i32, %arg1: i32, %arg2: i32) -> (i32, i32) {
    %c0_i32 = arith.constant 0 : i32
    %c0_i32_0 = arith.constant 0 : i32
    %c0_i32_1 = arith.constant 0 : i32
    return %c0_i32, %c0_i32_0 : i32, i32
  }
  func.func @transform_4(%arg0: i32, %arg1: i32, %arg2: i32) -> (i32, i32) {
    %c0_i32 = arith.constant 0 : i32
    %c0_i32_0 = arith.constant 0 : i32
    %c0_i32_1 = arith.constant 0 : i32
    return %c0_i32, %c0_i32_0 : i32, i32
  }
  func.func @transform_5(%arg0: i32, %arg1: i32, %arg2: i32) -> (i32, i32) {
    %c0_i32 = arith.constant 0 : i32
    %c0_i32_0 = arith.constant 0 : i32
    %c0_i32_1 = arith.constant 0 : i32
    return %c0_i32, %c0_i32_0 : i32, i32
  }
  func.func @transform_6(%arg0: i32, %arg1: i32, %arg2: i32) -> (i32, i32) {
    %c0_i32 = arith.constant 0 : i32
    %c0_i32_0 = arith.constant 0 : i32
    %c0_i32_1 = arith.constant 0 : i32
    return %c0_i32, %c0_i32_0 : i32, i32
  }
  func.func @transform_7(%arg0: i32, %arg1: i32, %arg2: i32) -> (i32, i32) {
    %c0_i32 = arith.constant 0 : i32
    %c0_i32_0 = arith.constant 0 : i32
    %c0_i32_1 = arith.constant 0 : i32
    return %c0_i32, %c0_i32_0 : i32, i32
  }
  func.func @transform_8(%arg0: i32, %arg1: i32, %arg2: i32) -> (i32, i32) {
    %c0_i32 = arith.constant 0 : i32
    %c0_i32_0 = arith.constant 0 : i32
    %c0_i32_1 = arith.constant 0 : i32
    return %c0_i32, %c0_i32_0 : i32, i32
  }
  func.func @transform_9(%arg0: i32, %arg1: i32, %arg2: i32) -> (i32, i32) {
    %c0_i32 = arith.constant 0 : i32
    %c0_i32_0 = arith.constant 0 : i32
    %c0_i32_1 = arith.constant 0 : i32
    return %c0_i32, %c0_i32_0 : i32, i32
  }
  func.func @transform_10(%arg0: i32, %arg1: i32, %arg2: i32) -> (i32, i32, i32) {
    %c0_i32 = arith.constant 0 : i32
    %c0_i32_0 = arith.constant 0 : i32
    return %arg0, %arg1, %c0_i32 : i32, i32, i32
  }
}

</mosaic_0001>

<bundles_post_ra>
// kernel: tpu_custom_call.1
= control target key start
LH: loop header
LB: loop body
LE: loop exit
PB: predicated region body
PF: predicated region fallthrough
CT: control target
= control target key end

     0   :  { %s2732_s0 = inlined_call_operand.hbm [shape: f32[2,16,128], index: 0, kind: input, shape index: {}]   ;;  %s2733_s1 = inlined_call_operand.hbm [shape: f32[2,16,128], index: 1, kind: input, shape index: {}]   ;;  %s2734_s2 = inlined_call_operand.vmem [shape: f32[1,128], index: 2, kind: input, shape index: {}]   ;;  %s2735_s3 = inlined_call_operand.hbm [shape: f32[1,128], index: 3, kind: input, shape index: {}]   ;;  %s2736_s4 = inlined_call_operand.hbm [shape: bf16[128,128], index: 4, kind: input, shape index: {}]   ;;  %s2737_s5 = inlined_call_operand.vmem [shape: f32[1,128], index: 5, kind: input, shape index: {}]   ;;  %s2738_s6 = inlined_call_operand.hbm [shape: bf16[128,256], index: 6, kind: input, shape index: {}]   ;;  %s2739_s7 = inlined_call_operand.vmem [shape: f32[1,256], index: 7, kind: input, shape index: {}]   ;;  %s2740_s8 = inlined_call_operand.hbm [shape: bf16[128,128], index: 8, kind: input, shape index: {}]   ;;  %s2741_s9 = inlined_call_operand.vmem [shape: f32[1,128], index: 9, kind: input, shape index: {}]   ;;  %s2742_s10 = inlined_call_operand.hbm [shape: f32[2,16,128], index: 10, kind: output, shape index: {}]  }
   0x1   :  { %2749 = sst [smem:[#allocation33_spill]] %s2735_s3 }
   0x2   :  { %2750 = sst [smem:[#allocation34_spill]] %s2736_s4 }
   0x3   :  { %2751 = sst [smem:[#allocation35_spill]] %s2737_s5 }
   0x4   :  { %2752 = sst [smem:[#allocation36_spill]] %s2738_s6 }
   0x5   :  { %2753 = sst [smem:[#allocation37_spill]] %s2739_s7 }
   0x6   :  { %2754 = sst [smem:[#allocation38_spill]] %s2740_s8 }
   0x7   :  { %2755 = sst [smem:[#allocation39_spill]] %s2741_s9 }
   0x8   :  { %2756 = sst [smem:[#allocation40_spill]] %s2742_s10 }
   0x9   :  { %15 = vsyncpa [#allocation8], 0 }
   0xa   :  { %17 = vsyncpa [#allocation8 + $0x1], 0 }
   0xb   :  { %18 = vsyncpa [#allocation11], 0 }
   0xc   :  { %20 = vsyncpa [#allocation11 + $0x1], 0 }
   0xd   :  { %21 = vsyncpa [#allocation14], 0 }
   0xe   :  { %22 = vsyncpa [#allocation17], 0 }
   0xf   :  { %23 = vsyncpa [#allocation9], 0 }
  0x10   :  { %25 = vsyncpa [#allocation9 + $0x1], 0  ;;  %s2307_s13 = smov 0   ;;  %s2309_s14 = smov 0  }
  0x11   :  { %s2311_s15 = smov 0   ;;  %s2313_s16 = smov 0  }
  0x12   :  { %s2315_s17 = smov 0   ;;  %s2317_s18 = smov 0  }
  0x13   :  { %s2319_s19 = smov 0   ;;  %s2321_s20 = smov 0  }
  0x14   :  { %s2323_s21 = smov 0   ;;  %s2325_s22 = smov 0  }
  0x15   :  { %s2327_s23 = smov 0   ;;  %s2329_s24 = smov 0  }
  0x16   :  { %s2331_s25 = smov 0  }
  0x17 LB: > { %2757 = sst [smem:[#allocation25_spill]] %s2203_s19  ;;  %s2373_s26 = sadd.s32 4294967295, %s2227_s25   ;;  %s2227_s25 = sphi %s2331_s25, %s31_s25   ;;  %s2223_s24 = sphi %s2329_s24, %s2789_s24   ;;  %s2219_s23 = sphi %s2327_s23, %s2799_s23   ;;  %s2215_s22 = sphi %s2325_s22, %s2798_s22   ;;  %s2211_s21 = sphi %s2323_s21, %s2786_s21   ;;  %s2207_s20 = sphi %s2321_s20, %s2797_s20   ;;  %s2203_s19 = sphi %s2319_s19, %s2796_s19   ;;  %s2199_s18 = sphi %s2317_s18, %s2795_s18   ;;  %s2195_s17 = sphi %s2315_s17, %s2794_s17   ;;  %s2191_s16 = sphi %s2313_s16, %s2793_s16   ;;  %s2187_s15 = sphi %s2311_s15, %s2792_s15   ;;  %s2183_s14 = sphi %s2309_s14, %s2791_s14   ;;  %s2179_s13 = sphi %s2307_s13, %s2790_s13  }
  0x18   : > { %2758 = sst [smem:[#allocation26_spill]] %s2207_s20  ;;  %p1476_p0 = scmp.ge.s32.totalorder %s2227_s25, 1 }
  0x19   : > { %2759 = sst [smem:[#allocation27_spill]] %s2211_s21  ;;  %p73_p1 = scmp.eq.s32.totalorder %s2373_s26, 0 }
  0x1a   : > { %2760 = sst [smem:[#allocation28_spill]] %s2223_s24  ;;  %p307_p2 = scmp.lt.s32.totalorder %s2227_s25, 9 }
  0x1b   : > { %s2761_s3 = sld [smem:[#allocation33_spill]]  ;;  %s2229_s11 = smov [#allocation12]  }
  0x1c   : > { %p2381_p3 = pnand %p1476_p0, %p307_p2  ;;  %s324_s12 = sshll.u32 %s2229_s11, 4  ;;  %s325_s12 = int_to_ptr.vmem [resolvable:$true] %s324_s12 }
  0x1d   : > { %s2763_s4 = sld [smem:[#allocation34_spill]]  ;;  %s2230_s27 = smov [#allocation13]  }
  0x1e   : > { %p1693_p4 = pneg %p2381_p3  ;;  %s335_s28 = sshll.u32 %s2230_s27, 4  ;;  %s336_s28 = int_to_ptr.vmem [resolvable:$true] %s335_s28 }
  0x1f   : > { %s2231_s11 = smov 64   ;;  %s2765_s6 = sld [smem:[#allocation36_spill]] }
  0x20   : > { %p2392_p5 = pnand %p1693_p4, %p73_p1  ;;  %s2233_s7 = smov [#allocation15]  }
  0x21   : > { %s322_s29 = sshll.u32 %s2761_s3, 4  ;;  %s2232_s3 = smov 4   ;;  %s323_s29 = int_to_ptr.hbm [resolvable:$true] %s322_s29 }
  0x22   : > { %1696 = dma.hbm_to_vmem [thread:$0]  (!%p2392_p5), %s323_s29, 16, %s325_s12, [#allocation11]  }
  0x23   : > { %s333_s21 = sshll.u32 %s2763_s4, 4  ;;  %s352_s5 = sshll.u32 %s2233_s7, 4  ;;  %s334_s21 = int_to_ptr.hbm [resolvable:$true] %s333_s21  ;;  %s353_s5 = int_to_ptr.vmem [resolvable:$true] %s352_s5 }
  0x24   : > { %1699 = dma.hbm_to_vmem [thread:$0]  (!%p2392_p5), %s334_s21, 1024, %s336_s28, [#allocation14], %s2231_s11, %s2231_s11, %s2232_s3  }
  0x25   : > { %s350_s4 = sshll.u32 %s2765_s6, 4  ;;  %s2766_s8 = sld [smem:[#allocation38_spill]]  ;;  %s351_s4 = int_to_ptr.hbm [resolvable:$true] %s350_s4 }
  0x26   : > { %s2234_s19 = smov 128   ;;  %s2235_s21 = smov 8  }
  0x27   : > { %1702 = dma.hbm_to_vmem [thread:$0]  (!%p2392_p5), %s351_s4, 2048, %s353_s5, [#allocation14], %s2234_s19, %s2234_s19, %s2235_s21  }
  0x28   : > { %s2236_s28 = smov [#allocation16]   ;;  %s43_s10 = sadd.s32 1, %s2215_s22 }
  0x29   : > { %s369_s7 = sshll.u32 %s2236_s28, 4  ;;  %p44_p6 = scmp.ge.s32.totalorder %s43_s10, 2  ;;  %s370_s7 = int_to_ptr.vmem [resolvable:$true] %s369_s7 }
  0x2a   : > { %s46_s4 = sadd.s32 1, %s2219_s23  ;;  %s1475_s5 = sadd.s32 4294967294, %s2227_s25  }
  0x2b   : > { %s367_s12 = sshll.u32 %s2766_s8, 4  ;;  %s50_s19 = sadd.s32 1, %s2223_s24  ;;  %s368_s12 = int_to_ptr.hbm [resolvable:$true] %s367_s12 }
  0x2c   : > { %1705 = dma.hbm_to_vmem [thread:$0]  (!%p2392_p5), %s368_s12, 1024, %s370_s7, [#allocation17], %s2231_s11, %s2231_s11, %s2232_s3  }
  0x2d   : > { %s2801_s10 = smov (%p44_p6, %s43_s10), 0  ;;  %s2803_s4 = smov (!%p44_p6, %s46_s4), %s2219_s23 }
  0x2e   : > { %2767 = sst [smem:[#allocation29_spill]] %s2801_s10  ;;  %p66_p7 = scmp.ne.s32.totalorder %s2199_s18, %s2195_s17 }
  0x2f   : > { %p67_p8 = scmp.eq.s32.totalorder %s2227_s25, 0  ;;  %p48_p9 = scmp.ge.s32.totalorder %s2803_s4, 2 }
  0x30   : > { %p72_p10 = scmp.ne.s32.totalorder %s2195_s17, %s2191_s16  ;;  %s59_s3 = sadd.s32 1, %s2199_s18 }
  0x31   : > { %p2428_p11 = por %p67_p8, %p66_p7  ;;  %s2805_s4 = smov (%p48_p9, %s2803_s4), 0 }
  0x32   : > { %2769 = sst [smem:[#allocation30_spill]] %s2805_s4  ;;  %s2807_s19 = smov (!%p48_p9, %s50_s19), %s2223_s24 }
  0x33   : > { %p2440_p12 = por %p73_p1, %p72_p10  ;;  %s83_s20 = ssub.s32 %s2215_s22, %s2801_s10 }
  0x34   : > { %p52_p13 = scmp.ge.s32.totalorder %s2807_s19, 2  ;;  %p294_p0 = scmp.eq.s32.totalorder %s2373_s26, 7 }
  0x35   : > { %s55_s27 = ssub.s32 %s2219_s23, %s2805_s4  ;;  %p300_p2 = scmp.eq.s32.totalorder %s1475_s5, 7 }
  0x36   : > { %s2809_s19 = smov (%p52_p13, %s2807_s19), 0  ;;  %p2454_p4 = por %p294_p0, %p66_p7 }
  0x37   : > { %2771 = sst [smem:[#allocation31_spill]] %s2809_s19  ;;  %p2461_p5 = por %p300_p2, %p72_p10 }
  0x38   : > { %s54_s21 = ssub.s32 %s2223_s24, %s2809_s19  ;;  %s386_s28 = sand.u32 1, %s2199_s18  }
  0x39   : > { %s2773_s12 = scalar_select %p2461_p5, 1, 0 }
  0x3a   : > { %s56_s7 = sor.u32 %s55_s27, %s54_s21  ;;  %p1721_p6 = scmp.lt.s32.totalorder %s2227_s25, 8 }
  0x3b   : > { %2774 = sst [smem:[#allocation32_spill]] %s2773_s12  ;;  %p57_p9 = scmp.eq.s32.totalorder %s56_s7, 0 }
  0x3c   : > { %s84_s5 = sor.u32 %s83_s20, %s54_s21  ;;  %s1482_s6 = sshll.u32 %s386_s28, 3 }
  0x3d   : > { %s2470_s8 = scalar_select %p57_p9, %s2199_s18, %s59_s3  }
  0x3e   : > { %s1483_s4 = sshll.u32 %s2223_s24, 1  ;;  %s390_s12 = scalar_lea.vmem [#allocation7], %s1482_s6 }
  0x3f   : > { %s394_s10 = sadd.s32 %s2219_s23, %s1483_s4  ;;  %s400_s19 = sshll.u32 %s390_s12, 4  ;;  %s401_s19 = int_to_ptr.vmem [resolvable:$true] %s400_s19 }
  0x40   : > { %s1484_s27 = sshll.u32 %s394_s10, 3  ;;  %p1707_p7 = pnand %p1721_p6, %p2428_p11 }
  0x41   : > { %s396_s7 = scalar_lea.hbm %s2732_s0, %s1484_s27  ;;  %p85_p10 = scmp.eq.s32.totalorder %s84_s5, 0 }
  0x42   : > { %s398_s3 = sshll.u32 %s396_s7, 4  ;;  %s387_s24 = scalar_lea.sflag [#allocation8], %s386_s28  ;;  %s399_s3 = int_to_ptr.hbm [resolvable:$true] %s398_s3 }
  0x43   : > { %1709 = dma.hbm_to_vmem [thread:$0]  (!%p1707_p7), %s399_s3, 128, %s401_s19, %s387_s24  }
  0x44   : > { %s87_s6 = sadd.s32 1, %s2187_s15  ;;  %p94_p13 = scmp.ne.s32.totalorder %s2187_s15, %s2183_s14 }
  0x45   : > { %s2485_s12 = scalar_select %p85_p10, %s2187_s15, %s87_s6  }
  0x46   : > { %s415_s10 = sadd.s32 %s2215_s22, %s1483_s4  ;;  %p100_p0 = scmp.ne.s32.totalorder %s2183_s14, %s2179_s13 }
  0x47   : > { %p96_p2 = por %p94_p13, %p67_p8  ;;  %s409_s20 = sand.u32 1, %s2187_s15  }
  0x48   : > { %p2495_p9 = por %p100_p0, %p73_p1  ;;  %s407_s5 = sand.u32 1, %s2227_s25  }
  0x49   : > { %s1485_s27 = sshll.u32 %s409_s20, 3  ;;  %s1487_s21 = sshll.u32 %s415_s10, 3 }
  0x4a   : > { %s417_s19 = scalar_lea.hbm %s2733_s1, %s1487_s21  ;;  %s411_s3 = scalar_lea.vmem [#allocation10], %s1485_s27 }
  0x4b   : > { %s419_s7 = sshll.u32 %s417_s19, 4  ;;  %s421_s6 = sshll.u32 %s411_s3, 4  ;;  %s420_s7 = int_to_ptr.hbm [resolvable:$true] %s419_s7  ;;  %s422_s6 = int_to_ptr.vmem [resolvable:$true] %s421_s6 }
  0x4c   : > { %p1710_p8 = pnand %p1721_p6, %p96_p2  ;;  %s408_s13 = scalar_lea.sflag [#allocation11], %s407_s5 }
  0x4d   : > { %430 = sbr.rel (%p2381_p3) target bundleno = 2376 (0x948), region = 60  ;;  %s2508_s4 = sand.u32 (!%p2381_p3), 1, %s2195_s17  }
  0x4e   : > { %1712 = dma.hbm_to_vmem [thread:$0]  (!%p1710_p8), %s420_s7, 128, %s422_s6, %s408_s13  }
  0x4f   : > { %s1489_s10 = sshll.u32 (!%p2381_p3), %s2508_s4, 3  ;;  %s433_s20 = scalar_lea.sflag (!%p2381_p3), [#allocation8], %s2508_s4 }
  0x50   : > { %s2512_s21 = scalar_lea.vmem (!%p2381_p3), [#allocation7], %s1489_s10 }
  0x52   : > { %2154 = dma.done.wait (%p2440_p12), %s433_s20, 128  }
  0x53   : > { %2156 = vsyncadd (%p2440_p12), %s433_s20, 4294967168  ;;  %s442_s30 = sand.u32 1, %s2373_s26   ;;  %s444_s5 = sand.u32 1, %s2183_s14  }
  0x54   : > { %s2520_s27 = sshll.u32 %s444_s5, 3  ;;  %s443_s28 = scalar_lea.sflag [#allocation11], %s442_s30 }
  0x55   : > { %s446_s24 = scalar_lea.vmem [#allocation10], %s2520_s27 }
  0x56   : > { %2158 = dma.done.wait (%p2495_p9), %s443_s28, 128  }
  0x57   : > { %2160 = vsyncadd (%p2495_p9), %s443_s28, 4294967168 }
  0x58   : > { %2162 = dma.done.wait (%p73_p1), [#allocation11], 16  }
  0x59   : > { %2164 = vsyncadd (%p73_p1), [#allocation11], 4294967280 }
  0x5a   : > { %2166 = dma.done.wait (%p73_p1), [#allocation14], 3072  }
  0x5b   : > { %2168 = vsyncadd (%p73_p1), [#allocation14], 4294964224 }
  0x5c   : > { %2170 = dma.done.wait (%p73_p1), [#allocation17], 1024  }
  0x5d   : > { %2172 = vsyncadd (%p73_p1), [#allocation17], 4294966272  ;;  %v2542_v0 = vld [vmem:[%s2734_s2] sm:$0x1]  ;;  %v2544_v1 = vld [vmem:[#allocation12] sm:$0x1] }
  0x5e   : > { %s2546_s19 = scalar_lea.vmem [#allocation18], %s1489_s10  ;;  %s2776_s7 = sld [smem:[#allocation25_spill]] }
  0x64   : > { %p1496_p3 = scmp.ne.s32.totalorder %s2776_s7, 0 }
  0x65   : > { %s2777_s6 = sld [smem:[#allocation35_spill]] (!%p1496_p3)  ;;  %s2238_s13 = smov (!%p1496_p3), 32  }
  0x66   : > { %515 = sbr.rel (%p1496_p3) target bundleno = 632 (0x278), region = 88  ;;  %s2239_s10 = smov (!%p1496_p3), 96  }
  0x67   : > { %s2240_s20 = smov (!%p1496_p3), 64  }
  0x6b   : > { %v516_v2 = vld [vmem:[%s2512_s21] sm:$0xff]  ;;  %v2237_v3 = vmov 128.0   ;;  %v1645_v15 = vld [vmem:[#allocation13 + $0x30] sm:$0xff]  ;;  %v545_v31 = vperm.slane %v2542_v0, 0  ;;  %v549_v34 = vperm.slane %v2544_v1, 0  ;;  %vm636_vm4 = vcmask 257024  }
  0x6c   : > { %517 = vadd.xlane.f32.xlu0 %v516_v2  ;;  %1855 = vrcp.f32 %v2237_v3  ;;  %v1646_v4 = vld [vmem:[#allocation13 + $0x38] sm:$0xff]  ;;  %v1644_v16 = vld [vmem:[#allocation13 + $0x28] sm:$0xff]  ;;  %v1643_v17 = vld [vmem:[#allocation13 + $0x20] sm:$0xff]  ;;  %vm654_vm5 = vcmask 7168   ;;  %v2241_v45 = vmov -inf   ;;  %v2242_v46 = vmov 0.0  }
  0x6d   : > { %621 = vmatpush.bf16.msra.mxu0 %v1646_v4  ;;  %v1642_v18 = vld [vmem:[#allocation13 + $0x18] sm:$0xff]  ;;  %v1641_v19 = vld [vmem:[#allocation13 + $0x10] sm:$0xff]  ;;  %v1640_v20 = vld [vmem:[#allocation13 + $0x8] sm:$0xff]  ;;  %655 = vst.msk [vmem:[#allocation3] sm:$0xff] %vm654_vm5, %v2241_v45  ;;  %vm663_vm6 = vcmask 261120  }
  0x6e   : > { %v1639_v21 = vld [vmem:[#allocation13] sm:$0xff]  ;;  %656 = vst.msk [vmem:[#allocation3 + $0x8] sm:$0xff] %vm654_vm5, %v2241_v45 }
  0x6f   : > { %v1854_v38 = vld [vmem:[%s2777_s6] ss:$0 sm:$0xff]  ;;  %657 = vst.msk [vmem:[#allocation3 + $0x10] sm:$0xff] %vm654_vm5, %v2241_v45 }
  0x70   : > { %658 = vst.msk [vmem:[#allocation3 + $0x18] sm:$0xff] %vm654_vm5, %v2241_v45 }
  0x71   : > { %622 = vmatpush.bf16.msra.mxu0 %v1645_v15  ;;  %659 = vst.msk [vmem:[#allocation4] sm:$0xff] %vm654_vm5, %v2242_v46 }
  0x72   : > { %v1856_v5 = vpop.eup %1855  ;;  %660 = vst.msk [vmem:[#allocation4 + $0x8] sm:$0xff] %vm654_vm5, %v2242_v46 }
  0x73   : > { %v520_v6 = vmul.f32 128.0, %v1856_v5  ;;  %vm524_vm0 = vweird.f32 %v1856_v5  ;;  %661 = vst.msk [vmem:[#allocation4 + $0x10] sm:$0xff] %vm654_vm5, %v2242_v46 }
  0x74   : > { %662 = vst.msk [vmem:[#allocation4 + $0x18] sm:$0xff] %vm654_vm5, %v2242_v46 }
  0x75   : > { %v521_v7 = vsub.f32 1.0, %v520_v6  ;;  %623 = vmatpush.bf16.msra.mxu0 %v1644_v16  ;;  %664 = vst.msk [vmem:[#allocation5] sm:$0xff] %vm663_vm6, %v2242_v46 }
  0x76   : > { %665 = vst.msk [vmem:[#allocation5 + $0x8] sm:$0xff] %vm663_vm6, %v2242_v46 }
  0x77   : > { %v522_v8 = vmul.f32 %v1856_v5, %v521_v7  ;;  %666 = vst.msk [vmem:[#allocation5 + $0x10] sm:$0xff] %vm663_vm6, %v2242_v46 }
  0x78   : > { %667 = vst.msk [vmem:[#allocation5 + $0x18] sm:$0xff] %vm663_vm6, %v2242_v46 }
  0x79   : > { %v523_v9 = vadd.f32 %v1856_v5, %v522_v8  ;;  %624 = vmatpush.bf16.msra.mxu0 %v1643_v17 }
  0x7b   : > { %v525_v10 = vsel %vm524_vm0, %v1856_v5, %v523_v9 }
  0x7d   : > { %625 = vmatpush.bf16.msra.mxu0 %v1642_v18 }
  0x81   : > { %626 = vmatpush.bf16.msra.mxu0 %v1641_v19 }
  0x85   : > { %627 = vmatpush.bf16.msra.mxu0 %v1640_v20 }
  0x89   : > { %628 = vmatpush.bf16.msra.mxu0 %v1639_v21 }
  0xdf   : > { %v518_v11 = vpop.xlane.xlu0 %517 }
  0xe0   : > { %v526_v12 = vmul.f32 %v525_v10, %v518_v11 }
  0xe2   : > { %v527_v13 = vsub.f32 %v516_v2, %v526_v12 }
  0xe4   : > { %v528_v14 = vmul.f32 %v527_v13, %v527_v13 }
  0xe6   : > { %529 = vadd.xlane.f32.xlu0 %v528_v14 }
 0x159   : > { %v530_v22 = vpop.xlane.xlu0 %529 }
 0x15a   : > { %v531_v23 = vmul.f32 %v530_v22, %v525_v10 }
 0x15c   : > { %v532_v24 = vadd.f32 1e-05, %v531_v23 }
 0x15e   : > { %1857 = vrsqrt.f32 %v532_v24  ;;  %vm539_vm2 = vweird.f32 %v532_v24 }
 0x164   : > { %v1858_v25 = vpop.eup %1857 }
 0x165   : > { %v534_v26 = vmul.f32 %v1858_v25, %v532_v24  ;;  %vm540_vm1 = vweird.f32 %v1858_v25 }
 0x166   : > { %vm541_vm3 = vmor %vm539_vm2, %vm540_vm1 }
 0x167   : > { %v535_v27 = vmul.f32 %v1858_v25, %v534_v26 }
 0x169   : > { %v536_v28 = vmul.f32 0.5, %v535_v27 }
 0x16b   : > { %v537_v29 = vsub.f32 1.5, %v536_v28 }
 0x16d   : > { %v538_v30 = vmul.f32 %v1858_v25, %v537_v29 }
 0x16f   : > { %v542_v32 = vsel %vm541_vm3, %v1858_v25, %v538_v30 }
 0x170   : > { %v543_v33 = vmul.f32 %v542_v32, %v527_v13 }
 0x172   : > { %v547_v35 = vmul.f32 %v545_v31, %v543_v33 }
 0x174   : > { %v551_v36 = vadd.f32 %v549_v34, %v547_v35 }
 0x176   : > { %v552_v37 = vpack.c.bf16 %v551_v36, %v551_v36 }
 0x178   : > { %629 = vmatmul.bf16.vlgmr.msra.gmra.mxu0 %v552_v37 }
 0x1f5   : > { %v630_v39 = vpop.f32.mrf.mxu0 }
 0x1f6   : > { %v631_v40 = vadd.f32 %v1854_v38, %v630_v39 }
 0x1f8   : > { %v634_v41 = vmul.f32 0.17677669, %v631_v40 }
 0x1fa   : > { %v635_v42 = vpack.c.bf16 %v634_v41, %v634_v41 }
 0x1fc   : > { %649 = vrot.lane.b32.xlu2 %v635_v42, %s2238_s13  ;;  %639 = vrot.lane.b32.xlu1 %v635_v42, %s2239_s10  ;;  %637 = vst.msk [vmem:[#allocation2] sm:$0xf] %vm636_vm4, %v635_v42 }
 0x1fd   : > { %v632_v43 = vpop.f32.mrf.mxu0 }
 0x204   : > { %644 = vrot.lane.b32.xlu1 %v635_v42, %s2240_s20 }
 0x256   : > { %v650_v44 = vpop.permute.xlu2 %649 }
 0x257   : > { %653 = vst.msk [vmem:[#allocation2 + $0xc] sm:$0xf] %vm636_vm4, %v650_v44 }
 0x26e   : > { %v640_v47 = vpop.permute.xlu1 %639 }
 0x26f   : > { %643 = vst.msk [vmem:[#allocation2 + $0x4] sm:$0xf] %vm636_vm4, %v640_v47 }
 0x276   : > { %v645_v48 = vpop.permute.xlu1 %644 }
 0x277   : > { %648 = vst.msk [vmem:[#allocation2 + $0x8] sm:$0xf] %vm636_vm4, %v645_v48 }
 0x278 PF: > { %v668_v49 = vld [vmem:[%s446_s24] sm:$0xff]  ;;  %v2243_v50 = vmov 128.0   ;;  %v1579_v5 = vld [vmem:[#allocation15 + $0x60] sm:$0xf]  ;;  %v1660_v6 = vld [vmem:[#allocation15 + $0x64] sm:$0xf0] }
 0x279   : > { %669 = vadd.xlane.f32.xlu0 %v668_v49  ;;  %1862 = vrcp.f32 %v2243_v50  ;;  %v1587_v51 = vld [vmem:[#allocation15 + $0x70] sm:$0xf]  ;;  %v1662_v52 = vld [vmem:[#allocation15 + $0x74] sm:$0xf0]  ;;  %v1661_v53 = vld [vmem:[#allocation15 + $0x74] sm:$0xf]  ;;  %v1580_v8 = vor.u32 %v1660_v6, %v1579_v5 }
 0x27a   : > { %v1588_v54 = vor.u32 %v1662_v52, %v1587_v51  ;;  %v1589_v55 = vld [vmem:[#allocation15 + $0x78] sm:$0xf0]  ;;  %v1659_v7 = vld [vmem:[#allocation15 + $0x64] sm:$0xf]  ;;  %v1581_v9 = vld [vmem:[#allocation15 + $0x68] sm:$0xf0] }
 0x27b   : > { %v1592_v56 = vor.u32 %v1661_v53, %v1589_v55  ;;  %v1584_v10 = vor.u32 %v1659_v7, %v1581_v9  ;;  %v1571_v11 = vld [vmem:[#allocation15 + $0x50] sm:$0xf]  ;;  %v1658_v12 = vld [vmem:[#allocation15 + $0x54] sm:$0xf0]  ;;  %v1657_v13 = vld [vmem:[#allocation15 + $0x54] sm:$0xf] }
 0x27c   : > { %807 = vmatpush.bf16.msra.mxu0 %v1588_v54  ;;  %v1572_v14 = vor.u32 %v1658_v12, %v1571_v11  ;;  %v1573_v15 = vld [vmem:[#allocation15 + $0x58] sm:$0xf0]  ;;  %v1563_v17 = vld [vmem:[#allocation15 + $0x40] sm:$0xf]  ;;  %v1656_v18 = vld [vmem:[#allocation15 + $0x44] sm:$0xf0] }
 0x27d   : > { %820 = vmatpush.bf16.msra.mxu1 %v1592_v56  ;;  %v1576_v16 = vor.u32 %v1657_v13, %v1573_v15  ;;  %v1655_v19 = vld [vmem:[#allocation15 + $0x44] sm:$0xf]  ;;  %v1564_v20 = vor.u32 %v1656_v18, %v1563_v17  ;;  %v1565_v21 = vld [vmem:[#allocation15 + $0x48] sm:$0xf0]  ;;  %v1555_v23 = vld [vmem:[#allocation15 + $0x30] sm:$0xf] }
 0x27e   : > { %v1568_v22 = vor.u32 %v1655_v19, %v1565_v21  ;;  %v1654_v24 = vld [vmem:[#allocation15 + $0x34] sm:$0xf0]  ;;  %v1653_v25 = vld [vmem:[#allocation15 + $0x34] sm:$0xf]  ;;  %v1557_v27 = vld [vmem:[#allocation15 + $0x38] sm:$0xf0] }
 0x27f   : > { %v1863_v57 = vpop.eup %1862  ;;  %v1556_v26 = vor.u32 %v1654_v24, %v1555_v23  ;;  %v1560_v28 = vor.u32 %v1653_v25, %v1557_v27  ;;  %v1547_v29 = vld [vmem:[#allocation15 + $0x20] sm:$0xf]  ;;  %v1652_v30 = vld [vmem:[#allocation15 + $0x24] sm:$0xf0]  ;;  %v1651_v31 = vld [vmem:[#allocation15 + $0x24] sm:$0xf] }
 0x280   : > { %v672_v58 = vmul.f32 128.0, %v1863_v57  ;;  %vm676_vm7 = vweird.f32 %v1863_v57  ;;  %808 = vmatpush.bf16.msra.mxu0 %v1580_v8  ;;  %v1548_v32 = vor.u32 %v1652_v30, %v1547_v29  ;;  %v1549_v33 = vld [vmem:[#allocation15 + $0x28] sm:$0xf0]  ;;  %v1539_v35 = vld [vmem:[#allocation15 + $0x10] sm:$0xf]  ;;  %v697_v56 = vperm.slane %v2542_v0, 0 }
 0x281   : > { %821 = vmatpush.bf16.msra.mxu1 %v1584_v10  ;;  %v1552_v34 = vor.u32 %v1651_v31, %v1549_v33  ;;  %v1650_v36 = vld [vmem:[#allocation15 + $0x14] sm:$0xf0]  ;;  %v1649_v37 = vld [vmem:[#allocation15 + $0x14] sm:$0xf]  ;;  %v1541_v39 = vld [vmem:[#allocation15 + $0x18] sm:$0xf0] }
 0x282   : > { %v673_v59 = vsub.f32 1.0, %v672_v58  ;;  %v1540_v38 = vor.u32 %v1650_v36, %v1539_v35  ;;  %v1531_v40 = vld [vmem:[#allocation15] sm:$0xf]  ;;  %v1648_v41 = vld [vmem:[#allocation15 + $0x4] sm:$0xf0]  ;;  %v1544_v42 = vor.u32 %v1649_v37, %v1541_v39  ;;  %s2778_s27 = sld [smem:[#allocation37_spill]] }
 0x283   : > { %v1647_v43 = vld [vmem:[#allocation15 + $0x4] sm:$0xf]  ;;  %v1533_v44 = vld [vmem:[#allocation15 + $0x8] sm:$0xf0]  ;;  %v1532_v45 = vor.u32 %v1648_v41, %v1531_v40  ;;  %vm836_vm11 = vcmask 261120   ;;  %vm892_vm12 = vcmask 1043456  }
 0x284   : > { %v674_v60 = vmul.f32 %v1863_v57, %v673_v59  ;;  %809 = vmatpush.bf16.msra.mxu0 %v1572_v14  ;;  %v1536_v46 = vor.u32 %v1647_v43, %v1533_v44  ;;  %v701_v59 = vperm.slane %v2544_v1, 0  ;;  %s2244_s28 = smov 32   ;;  %s2245_s24 = smov 96   ;;  %v835_v12 = vld [vmem:[#allocation2] sm:$0xf]  ;;  %vm857_vm13 = vcmask 64512  }
 0x285   : > { %822 = vmatpush.bf16.msra.mxu1 %v1576_v16  ;;  %s2246_s11 = smov 64   ;;  %v2587_v21 = vld [vmem:[#allocation3] sm:$0xff]  ;;  %vm879_vm14 = vcmask 7168   ;;  %v1077_v25 = vld [vmem:[#allocation2 + $0xc] sm:$0xf]  ;;  %s2779_s9 = sld [smem:[#allocation25_spill]] }
 0x286   : > { %v675_v61 = vadd.f32 %v1863_v57, %v674_v60  ;;  %v913_v33 = vld [vmem:[#allocation2 + $0x4] sm:$0xf] }
 0x288   : > { %v2561_v62 = vsel %vm676_vm7, %v1863_v57, %v675_v61  ;;  %810 = vmatpush.bf16.msra.mxu0 %v1564_v20  ;;  %v2247_v20 = vmov 0  }
 0x289   : > { %823 = vmatpush.bf16.msra.mxu1 %v1568_v22  ;;  %1859 = vset.pattern.permute.xlu1 %v2247_v20 }
 0x28a   : > { %1860 = vset.pattern.permute.xlu2 %v2247_v20  ;;  %1861 = vset.pattern.permute.xlu0 %v2247_v20 }
 0x28b   : > { %p1601_p1 = scmp.ne.s32.totalorder %s2779_s9, 1 }
 0x28c   : > { %811 = vmatpush.bf16.msra.mxu0 %v1556_v26  ;;  %s2249_s7 = smov (!%p1601_p1), 96   ;;  %s2250_s26 = smov (!%p1601_p1), 32  }
 0x28d   : > { %824 = vmatpush.bf16.msra.mxu1 %v1560_v28  ;;  %s2251_s3 = smov (!%p1601_p1), 64   ;;  %s2780_s10 = sld [smem:[#allocation39_spill]] (!%p1601_p1) }
 0x290   : > { %812 = vmatpush.bf16.msra.mxu0 %v1548_v32 }
 0x291   : > { %825 = vmatpush.bf16.msra.mxu1 %v1552_v34  ;;  %v996_v34 = vld [vmem:[#allocation2 + $0x8] sm:$0xf] }
 0x294   : > { %813 = vmatpush.bf16.msra.mxu0 %v1540_v38 }
 0x295   : > { %826 = vmatpush.bf16.msra.mxu1 %v1544_v42 }
 0x298   : > { %814 = vmatpush.bf16.msra.mxu0 %v1532_v45 }
 0x299   : > { %827 = vmatpush.bf16.msra.mxu1 %v1536_v46 }
 0x2ec   : > { %v670_v63 = vpop.xlane.xlu0 %669 }
 0x2ed   : > { %v678_v2 = vmul.f32 %v2561_v62, %v670_v63  ;;  %v721_v63 = vld [vmem:[%s2778_s27] sm:$0x3] }
 0x2ef   : > { %v2564_v3 = vsub.f32 %v668_v49, %v678_v2  ;;  %v723_v2 = vperm.slane %v721_v63, 0 }
 0x2f1   : > { %v680_v4 = vmul.f32 %v2564_v3, %v2564_v3 }
 0x2f3   : > { %681 = vadd.xlane.f32.xlu0 %v680_v4  ;;  %v724_v4 = vperm.slane %v721_v63, 1 }
 0x366   : > { %v682_v47 = vpop.xlane.xlu0 %681 }
 0x367   : > { %v683_v48 = vmul.f32 %v682_v47, %v2561_v62  ;;  %v2616_v47 = vld [vmem:[#allocation3 + $0x18] sm:$0xff] }
 0x369   : > { %v684_v49 = vadd.f32 1e-05, %v683_v48 }
 0x36b   : > { %1864 = vrsqrt.f32 %v684_v49  ;;  %vm691_vm9 = vweird.f32 %v684_v49 }
 0x371   : > { %v1865_v50 = vpop.eup %1864 }
 0x372   : > { %v686_v51 = vmul.f32 %v1865_v50, %v684_v49  ;;  %vm692_vm8 = vweird.f32 %v1865_v50 }
 0x373   : > { %vm693_vm10 = vmor %vm691_vm9, %vm692_vm8 }
 0x374   : > { %v687_v52 = vmul.f32 %v1865_v50, %v686_v51  ;;  %v937_v51 = vld [vmem:[#allocation3 + $0x8] sm:$0xff] }
 0x376   : > { %v688_v53 = vmul.f32 0.5, %v687_v52 }
 0x378   : > { %v689_v54 = vsub.f32 1.5, %v688_v53 }
 0x37a   : > { %v690_v55 = vmul.f32 %v1865_v50, %v689_v54 }
 0x37c   : > { %v694_v57 = vsel %vm693_vm10, %v1865_v50, %v690_v55  ;;  %v1019_v55 = vld [vmem:[#allocation3 + $0x10] sm:$0xff] }
 0x37d   : > { %v695_v58 = vmul.f32 %v694_v57, %v2564_v3 }
 0x37f   : > { %v699_v60 = vmul.f32 %v697_v56, %v695_v58 }
 0x381   : > { %v703_v61 = vadd.f32 %v701_v59, %v699_v60 }
 0x383   : > { %v704_v62 = vpack.c.bf16 %v703_v61, %v703_v61 }
 0x385   : > { %815 = vmatmul.bf16.vlgmr.msra.gmra.mxu0 %v704_v62  ;;  %828 = vmatmul.bf16.vlgmr.msra.gmra.mxu1 %v704_v62 }
 0x402   : > { %v816_v5 = vpop.f32.mrf.mxu0  ;;  %v829_v6 = vpop.f32.mrf.mxu1 }
 0x403   : > { %v817_v7 = vadd.f32 %v816_v5, %v723_v2  ;;  %v830_v0 = vadd.f32 %v829_v6, %v724_v4  ;;  %v873_v6 = vld [vmem:[#allocation4] sm:$0xff] }
 0x405   : > { %v833_v3 = vpack.c.bf16 %v817_v7, %v817_v7  ;;  %v2575_v8 = vpack.c.bf16 %v830_v0, %v830_v0 }
 0x407   : > { %1078 = vrot.lane.b32.xlu0 %v833_v3, %s2244_s28  ;;  %915 = vrot.lane.b32.xlu2 %v833_v3, %s2245_s24  ;;  %v841_v1 = vsel %vm836_vm11, %v833_v3, 0  ;;  %v894_v9 = vsel %vm892_vm12, %v2575_v8, 0 }
 0x408   : > { %850 = vmatpush.bf16.xpose.msra.mxu2 %v841_v1  ;;  %903 = vmatpush.bf16.msra.mxu3 %v894_v9 }
 0x40a   : > { %v818_v10 = vpop.f32.mrf.mxu0  ;;  %v831_v11 = vpop.f32.mrf.mxu1 }
 0x40f   : > { %997 = vrot.lane.b32.xlu2 %v833_v3, %s2246_s11  ;;  %1593 = vmatmul.msk.bf16.vlgmr.msra.gmra.mxu2 %vm836_vm11, %v835_v12 }
 0x461   : > { %v916_v13 = vpop.permute.xlu2 %915 }
 0x462   : > { %v921_v14 = vsel %vm836_vm11, %v916_v13, 0 }
 0x463   : > { %930 = vmatpush.bf16.xpose.msrb.mxu3 %v921_v14 }
 0x469   : > { %v998_v30 = vpop.permute.xlu2 %997 }
 0x46a   : > { %v1003_v32 = vsel %vm836_vm11, %v998_v30, 0 }
 0x479   : > { %v1079_v15 = vpop.permute.xlu0 %1078 }
 0x47a   : > { %v1084_v16 = vsel %vm836_vm11, %v1079_v15, 0 }
 0x47b   : > { %1093 = vmatpush.bf16.xpose.msrb.mxu0 %v1084_v16 }
 0x482   : > { %1599 = vmatmul.msk.bf16.vlgmr.msrb.gmra.mxu0 %vm836_vm11, %v1077_v25 }
 0x492   : > { %v852_v17 = vpop.f32.mrf.mxu2 }
 0x493   : > { %v858_v18 = vsel %vm857_vm13, %v852_v17, -inf }
 0x494   : > { %859 = vmax.xlane.f32.xlu1 %v858_v18 }
 0x49a   : > { %v854_v19 = vpop.f32.mrf.mxu2 }
 0x4ff   : > { %v2602_v35 = vpop.f32.mrf.mxu0 }
 0x500   : > { %v1101_v36 = vsel %vm857_vm13, %v2602_v35, -inf }
 0x501   : > { %1102 = vmax.xlane.f32.xlu0 %v1101_v36 }
 0x507   : > { %v860_v22 = vpop.xlane.xlu1 %859  ;;  %v1097_v38 = vpop.f32.mrf.mxu0 }
 0x508   : > { %v2590_v23 = vmax.f32 %v2587_v21, %v860_v22 }
 0x50a   : > { %v862_v24 = vsub.f32 %v2587_v21, %v2590_v23  ;;  %911 = vst.msk [vmem:[#allocation3] sm:$0xff] %vm879_vm14, %v2590_v23  ;;  %867 = vperm.xlu1 %1859, %v2590_v23  }
 0x50c   : > { %v863_v4 = vmul.f32 1.442695, %v862_v24 }
 0x574   : > { %v1103_v48 = vpop.xlane.xlu0 %1102 }
 0x575   : > { %v2619_v49 = vmax.f32 %v2616_v47, %v1103_v48 }
 0x577   : > { %v1105_v50 = vsub.f32 %v2616_v47, %v2619_v49  ;;  %1156 = vst.msk [vmem:[#allocation3 + $0x18] sm:$0xff] %vm879_vm14, %v2619_v49 }
 0x579   : > { %v1106_v25 = vmul.f32 1.442695, %v1105_v50 }
 0x57c   : > { %v868_v26 = vpop.permute.xlu1 %867 }
 0x57d   : > { %v870_v27 = vsub.f32 %v852_v17, %v868_v26 }
 0x57f   : > { %v871_v28 = vmul.f32 1.442695, %v870_v27 }
 0x581   : > { %1866 = vpow2.f32 %v871_v28 }
 0x587   : > { %v1867_v29 = vpop.eup %1866 }
 0x588   : > { %v888_v31 = vpack.c.bf16 %v1867_v29, %v1867_v29  ;;  %v875_v46 = vsel %vm857_vm13, %v1867_v29, 0.0 }
 0x58a   : > { %1594 = vmatmul.msk.bf16.vlgmr.msra.gmra.mxu3 %vm857_vm13, %v888_v31  ;;  %v954_v31 = vld [vmem:[#allocation4 + $0x8] sm:$0xff] }
 0x58b   : > { %1012 = vmatpush.bf16.xpose.msra.mxu3 %v1003_v32 }
 0x59a   : > { %1595 = vmatmul.msk.bf16.vlgmr.msrb.gmra.mxu3 %vm836_vm11, %v913_v33 }
 0x5aa   : > { %1597 = vmatmul.msk.bf16.vlgmr.msra.gmra.mxu3 %vm836_vm11, %v996_v34 }
 0x60d   : > { %v2606_v37 = vpop.f32.mrf.mxu3 }
 0x615   : > { %v907_v39 = vpop.f32.mrf.mxu3 }
 0x61d   : > { %v932_v40 = vpop.f32.mrf.mxu3 }
 0x61e   : > { %v938_v41 = vsel %vm857_vm13, %v932_v40, -inf }
 0x61f   : > { %939 = vmax.xlane.f32.xlu2 %v938_v41 }
 0x625   : > { %v934_v42 = vpop.f32.mrf.mxu3 }
 0x626   : > { %v881_v42 = vld [vmem:[#allocation5] sm:$0xff] }
 0x62d   : > { %v2609_v43 = vpop.f32.mrf.mxu3 }
 0x62e   : > { %v1020_v44 = vsel %vm857_vm13, %v2609_v43, -inf }
 0x62f   : > { %1021 = vmax.xlane.f32.xlu1 %v1020_v44 }
 0x635   : > { %v1016_v45 = vpop.f32.mrf.mxu3 }
 0x648   : > { %971 = vrot.lane.b32.xlu1 %v2575_v8, %s2245_s24 }
 0x672   : > { %876 = vadd.xlane.f32.xlu1 %v875_v46 }
 0x692   : > { %v940_v52 = vpop.xlane.xlu2 %939 }
 0x693   : > { %v941_v53 = vmax.f32 %v937_v51, %v940_v52 }
 0x695   : > { %994 = vst.msk [vmem:[#allocation3 + $0x8] sm:$0xff] %vm879_vm14, %v941_v53  ;;  %947 = vperm.xlu2 %1860, %v941_v53   ;;  %v942_v54 = vsub.f32 %v937_v51, %v941_v53 }
 0x697   : > { %v943_v56 = vmul.f32 1.442695, %v942_v54 }
 0x699   : > { %1868 = vpow2.f32 %v943_v56  ;;  %v1036_v56 = vld [vmem:[#allocation4 + $0x10] sm:$0xff] }
 0x69d   : > { %1110 = vperm.xlu2 %1860, %v2619_v49   ;;  %v1125_v49 = vld [vmem:[#allocation5 + $0x18] sm:$0xff] }
 0x69f   : > { %v1869_v61 = vpop.eup %1868 }
 0x6a0   : > { %v955_v32 = vmul.f32 %v1869_v61, %v954_v31 }
 0x6a2   : > { %v1022_v57 = vpop.xlane.xlu1 %1021 }
 0x6a3   : > { %v1023_v58 = vmax.f32 %v1019_v55, %v1022_v57 }
 0x6a5   : > { %v1024_v59 = vsub.f32 %v1019_v55, %v1023_v58  ;;  %1075 = vst.msk [vmem:[#allocation3 + $0x10] sm:$0xff] %vm879_vm14, %v1023_v58  ;;  %1052 = vrot.lane.b32.xlu2 %v2575_v8, %s2246_s11  ;;  %1029 = vperm.xlu0 %1861, %v1023_v58  }
 0x6a7   : > { %v1025_v60 = vmul.f32 1.442695, %v1024_v59 }
 0x6a9   : > { %1870 = vpow2.f32 %v1025_v60 }
 0x6aa   : > { %1872 = vpow2.f32 %v863_v4 }
 0x6ad   : > { %1133 = vrot.lane.b32.xlu2 %v2575_v8, %s2244_s28  ;;  %965 = vperm.xlu0 %1861, %v1869_v61  }
 0x6af   : > { %v2632_v62 = vpop.eup %1870 }
 0x6b0   : > { %1047 = vperm.xlu1 %1859, %v2632_v62   ;;  %v1873_v5 = vpop.eup %1872  ;;  %v1037_v57 = vmul.f32 %v2632_v62, %v1036_v56 }
 0x6b1   : > { %v874_v7 = vmul.f32 %v1873_v5, %v873_v6 }
 0x6ba   : > { %v972_v63 = vpop.permute.xlu1 %971 }
 0x6bb   : > { %v977_v2 = vsel %vm892_vm12, %v972_v63, 0 }
 0x6bc   : > { %986 = vmatpush.bf16.msrb.mxu2 %v977_v2 }
 0x6e5   : > { %v877_v0 = vpop.xlane.xlu1 %876 }
 0x6e6   : > { %v878_v3 = vadd.f32 %v877_v0, %v874_v7 }
 0x6e8   : > { %880 = vst.msk [vmem:[#allocation4] sm:$0xff] %vm879_vm14, %v878_v3 }
 0x6ef   : > { %v948_v8 = vpop.permute.xlu2 %947 }
 0x6f0   : > { %v950_v1 = vsub.f32 %v932_v40, %v948_v8  ;;  %v962_v40 = vld [vmem:[#allocation5 + $0x8] sm:$0xff] }
 0x6f2   : > { %v951_v9 = vmul.f32 1.442695, %v950_v1 }
 0x6f4   : > { %1874 = vpow2.f32 %v951_v9 }
 0x6f7   : > { %v1111_v10 = vpop.permute.xlu2 %1110 }
 0x6f8   : > { %v1113_v11 = vsub.f32 %v2602_v35, %v1111_v10  ;;  %v1117_v35 = vld [vmem:[#allocation4 + $0x18] sm:$0xff] }
 0x6fa   : > { %v1875_v12 = vpop.eup %1874  ;;  %v1114_v13 = vmul.f32 1.442695, %v1113_v11 }
 0x6fb   : > { %v956_v14 = vsel %vm857_vm13, %v1875_v12, 0.0  ;;  %v969_v15 = vpack.c.bf16 %v1875_v12, %v1875_v12 }
 0x6fc   : > { %1876 = vpow2.f32 %v1114_v13  ;;  %957 = vadd.xlane.f32.xlu2 %v956_v14 }
 0x6fd   : > { %1596 = vmatmul.msk.bf16.vlgmr.msrb.gmra.mxu2 %vm857_vm13, %v969_v15 }
 0x6ff   : > { %v1053_v16 = vpop.permute.xlu2 %1052 }
 0x700   : > { %v1058_v17 = vsel %vm892_vm12, %v1053_v16, 0 }
 0x701   : > { %1067 = vmatpush.bf16.msra.mxu2 %v1058_v17 }
 0x702   : > { %v1877_v18 = vpop.eup %1876 }
 0x703   : > { %v1119_v19 = vsel %vm857_vm13, %v1877_v18, 0.0  ;;  %v1132_v22 = vpack.c.bf16 %v1877_v18, %v1877_v18 }
 0x704   : > { %1120 = vadd.xlane.f32.xlu2 %v1119_v19 }
 0x707   : > { %v1134_v20 = vpop.permute.xlu2 %1133 }
 0x708   : > { %v1139_v21 = vsel %vm892_vm12, %v1134_v20, 0 }
 0x709   : > { %1148 = vmatpush.bf16.msrb.mxu1 %v1139_v21 }
 0x70c   : > { %1600 = vmatmul.msk.bf16.vlgmr.msrb.gmra.mxu1 %vm857_vm13, %v1132_v22 }
 0x717   : > { %v1030_v23 = vpop.permute.xlu0 %1029 }
 0x718   : > { %v1032_v24 = vsub.f32 %v2609_v43, %v1030_v23 }
 0x71a   : > { %v1033_v26 = vmul.f32 1.442695, %v1032_v24 }
 0x71c   : > { %1878 = vpow2.f32 %v1033_v26  ;;  %884 = vperm.xlu2 %1860, %v1873_v5  }
 0x71d   : > { %1880 = vpow2.f32 %v1106_v25 }
 0x71f   : > { %v966_v41 = vpop.permute.xlu0 %965 }
 0x720   : > { %v968_v43 = vmul.f32 %v966_v41, %v962_v40 }
 0x722   : > { %v1879_v27 = vpop.eup %1878  ;;  %v1048_v60 = vpop.permute.xlu1 %1047 }
 0x723   : > { %v1881_v28 = vpop.eup %1880  ;;  %v1051_v29 = vpack.c.bf16 %v1879_v27, %v1879_v27  ;;  %v1038_v30 = vsel %vm857_vm13, %v1879_v27, 0.0 }
 0x724   : > { %1039 = vadd.xlane.f32.xlu0 %v1038_v30  ;;  %1128 = vperm.xlu2 %1860, %v1881_v28   ;;  %v1118_v36 = vmul.f32 %v1881_v28, %v1117_v35 }
 0x725   : > { %1598 = vmatmul.msk.bf16.vlgmr.msra.gmra.mxu2 %vm857_vm13, %v1051_v29 }
 0x76f   : > { %v958_v33 = vpop.xlane.xlu2 %957 }
 0x770   : > { %v959_v34 = vadd.f32 %v958_v33, %v955_v32 }
 0x772   : > { %960 = vst.msk [vmem:[#allocation4 + $0x8] sm:$0xff] %vm879_vm14, %v959_v34 }
 0x777   : > { %v1121_v38 = vpop.xlane.xlu2 %1120 }
 0x778   : > { %v1122_v39 = vadd.f32 %v1121_v38, %v1118_v36 }
 0x77a   : > { %1123 = vst.msk [vmem:[#allocation4 + $0x18] sm:$0xff] %vm879_vm14, %v1122_v39 }
 0x77f   : > { %v885_v44 = vpop.permute.xlu2 %884 }
 0x780   : > { %v887_v45 = vmul.f32 %v885_v44, %v881_v42  ;;  %v988_v46 = vpop.f32.mrf.mxu2 }
 0x781   : > { %v992_v47 = vadd.f32 %v988_v46, %v968_v43 }
 0x782   : > { %v909_v48 = vadd.f32 %v2606_v37, %v887_v45  ;;  %v1044_v37 = vld [vmem:[#allocation5 + $0x10] sm:$0xff] }
 0x783   : > { %993 = vst.msk [vmem:[#allocation5 + $0x8] sm:$0xff] %vm836_vm11, %v992_v47  ;;  %v1050_v61 = vmul.f32 %v1048_v60, %v1044_v37 }
 0x784   : > { %910 = vst.msk [vmem:[#allocation5] sm:$0xff] %vm836_vm11, %v909_v48 }
 0x787   : > { %v1129_v50 = vpop.permute.xlu2 %1128 }
 0x788   : > { %v1131_v51 = vmul.f32 %v1129_v50, %v1125_v49  ;;  %v990_v52 = vpop.f32.mrf.mxu2 }
 0x789   : > { %v1150_v53 = vpop.f32.mrf.mxu1 }
 0x78a   : > { %v1154_v54 = vadd.f32 %v1150_v53, %v1131_v51 }
 0x78c   : > { %1155 = vst.msk [vmem:[#allocation5 + $0x18] sm:$0xff] %vm836_vm11, %v1154_v54 }
 0x791   : > { %v1152_v55 = vpop.f32.mrf.mxu1 }
 0x797   : > { %v1040_v58 = vpop.xlane.xlu0 %1039 }
 0x798   : > { %v1041_v59 = vadd.f32 %v1040_v58, %v1037_v57 }
 0x79a   : > { %1042 = vst.msk [vmem:[#allocation4 + $0x10] sm:$0xff] %vm879_vm14, %v1041_v59 }
 0x7a8   : > { %v1069_v63 = vpop.f32.mrf.mxu2 }
 0x7a9   : > { %v1073_v2 = vadd.f32 %v1069_v63, %v1050_v61 }
 0x7ab   : > { %1074 = vst.msk [vmem:[#allocation5 + $0x10] sm:$0xff] %vm836_vm11, %v1073_v2 }
 0x7ac   : > { %1160 = sbr.rel (%p1601_p1) target bundleno = 2353 (0x931), region = 92 }
 0x7b0   : > { %v1071_v4 = vpop.f32.mrf.mxu2 }
 0x7b1   : > { %v1201_v5 = vld [vmem:[#allocation4 + $0x18] sm:$0xff]  ;;  %v1171_v6 = vld [vmem:[#allocation4 + $0x8] sm:$0xff]  ;;  %v2248_v7 = vmov 0   ;;  %v1161_v62 = vld [vmem:[#allocation4] sm:$0xff]  ;;  %vm1184_vm15 = vcmask 523520   ;;  %vm1199_vm0 = vcmask 785920  }
 0x7b2   : > { %1883 = vset.pattern.permute.xlu1 %v2248_v7  ;;  %1885 = vrcp.f32 %v1201_v5  ;;  %1882 = vset.pattern.permute.xlu0 %v2248_v7  ;;  %v1186_v0 = vld [vmem:[#allocation4 + $0x10] sm:$0xff]  ;;  %v1670_v10 = vld [vmem:[#allocation16 + $0x38] sm:$0xff]  ;;  %v1203_v11 = vld [vmem:[#allocation5 + $0x18] sm:$0xff]  ;;  %vm1214_vm1 = vcmask 1048320  }
 0x7b3   : > { %1887 = vrcp.f32 %v1171_v6  ;;  %1286 = vmatpush.bf16.msra.mxu0 %v1670_v10  ;;  %v1173_v12 = vld [vmem:[#allocation5 + $0x8] sm:$0xff]  ;;  %v1163_v17 = vld [vmem:[#allocation5] sm:$0xff]  ;;  %v1188_v18 = vld [vmem:[#allocation5 + $0x10] sm:$0xff] }
 0x7b4   : > { %1889 = vrcp.f32 %v1161_v62  ;;  %v1669_v23 = vld [vmem:[#allocation16 + $0x30] sm:$0xff]  ;;  %v1668_v24 = vld [vmem:[#allocation16 + $0x28] sm:$0xff]  ;;  %v1667_v25 = vld [vmem:[#allocation16 + $0x20] sm:$0xff] }
 0x7b5   : > { %1891 = vrcp.f32 %v1186_v0  ;;  %v1666_v26 = vld [vmem:[#allocation16 + $0x18] sm:$0xff]  ;;  %v1665_v27 = vld [vmem:[#allocation16 + $0x10] sm:$0xff]  ;;  %v1664_v28 = vld [vmem:[#allocation16 + $0x8] sm:$0xff] }
 0x7b6   : > { %v1663_v29 = vld [vmem:[#allocation16] sm:$0xff] }
 0x7b7   : > { %1287 = vmatpush.bf16.msra.mxu0 %v1669_v23  ;;  %v1884_v35 = vld [vmem:[%s2780_s10] ss:$0 sm:$0xff] }
 0x7b8   : > { %v1886_v3 = vpop.eup %1885  ;;  %v1299_v38 = vld [vmem:[%s2512_s21] sm:$0xff] }
 0x7b9   : > { %v1888_v8 = vpop.eup %1887  ;;  %1206 = vperm.xlu1 %1883, %v1886_v3  }
 0x7ba   : > { %1176 = vperm.xlu0 %1882, %v1888_v8   ;;  %v1890_v1 = vpop.eup %1889 }
 0x7bb   : > { %v1892_v9 = vpop.eup %1891  ;;  %1288 = vmatpush.bf16.msra.mxu0 %v1668_v24 }
 0x7bf   : > { %1289 = vmatpush.bf16.msra.mxu0 %v1667_v25 }
 0x7c1   : > { %1166 = vperm.xlu1 %1883, %v1890_v1  }
 0x7c2   : > { %1191 = vperm.xlu0 %1882, %v1892_v9  }
 0x7c3   : > { %1290 = vmatpush.bf16.msra.mxu0 %v1666_v26 }
 0x7c7   : > { %1291 = vmatpush.bf16.msra.mxu0 %v1665_v27 }
 0x7cb   : > { %1292 = vmatpush.bf16.msra.mxu0 %v1664_v28 }
 0x7cf   : > { %1293 = vmatpush.bf16.msra.mxu0 %v1663_v29 }
 0x82b   : > { %v1207_v13 = vpop.permute.xlu1 %1206 }
 0x82c   : > { %v1209_v14 = vmul.f32 %v1207_v13, %v1203_v11  ;;  %v1177_v15 = vpop.permute.xlu0 %1176 }
 0x82d   : > { %v1179_v16 = vmul.f32 %v1177_v15, %v1173_v12 }
 0x82e   : > { %1211 = vrot.lane.b32.xlu0 %v1209_v14, %s2249_s7 }
 0x82f   : > { %1181 = vrot.lane.b32.xlu2 %v1179_v16, %s2250_s26 }
 0x833   : > { %v1167_v19 = vpop.permute.xlu1 %1166 }
 0x834   : > { %v1169_v20 = vmul.f32 %v1167_v19, %v1163_v17  ;;  %v1192_v21 = vpop.permute.xlu0 %1191 }
 0x835   : > { %v1194_v22 = vmul.f32 %v1192_v21, %v1188_v18 }
 0x836   : > { %1170 = vst.msk [vmem:[#allocation6] sm:$0xff] %vm836_vm11, %v1169_v20 }
 0x837   : > { %1196 = vrot.lane.b32.xlu2 %v1194_v22, %s2251_s3 }
 0x889   : > { %v1182_v30 = vpop.permute.xlu2 %1181 }
 0x88a   : > { %1185 = vst.msk [vmem:[#allocation6] sm:$0xff] %vm1184_vm15, %v1182_v30 }
 0x891   : > { %v1197_v31 = vpop.permute.xlu2 %1196 }
 0x892   : > { %1200 = vst.msk [vmem:[#allocation6] sm:$0xff] %vm1199_vm0, %v1197_v31 }
 0x8a0   : > { %v1212_v32 = vpop.permute.xlu0 %1211 }
 0x8a1   : > { %1215 = vst.msk [vmem:[#allocation6] sm:$0xff] %vm1214_vm1, %v1212_v32 }
 0x8a8   : > { %v1216_v33 = vld [vmem:[#allocation6] sm:$0xff] }
 0x8a9   : > { %v1217_v34 = vpack.c.bf16 %v1216_v33, %v1216_v33 }
 0x8ab   : > { %1294 = vmatmul.bf16.vlgmr.msra.gmra.mxu0 %v1217_v34 }
 0x928   : > { %v1295_v36 = vpop.f32.mrf.mxu0 }
 0x929   : > { %v1296_v39 = vadd.f32 %v1884_v35, %v1295_v36 }
 0x92b   : > { %v1300_v40 = vadd.f32 %v1299_v38, %v1296_v39 }
 0x92d   : > { %1301 = vst [vmem:[%s2546_s19] sm:$0xff] %v1300_v40 }
 0x930   : > { %v1297_v41 = vpop.f32.mrf.mxu0 }
 0x931 PF: > { %s2781_s20 = sld [smem:[#allocation27_spill]]  ;;  %s1317_s28 = sshll.u32 %s2546_s19, 4  ;;  %s1318_s28 = int_to_ptr.vmem [resolvable:$true] %s1317_s28 }
 0x932   : > { %s2782_s30 = sld [smem:[#allocation26_spill]]  ;;  %s1303_s3 = scalar_lea.sflag [#allocation9], %s2508_s4 }
 0x933   : > { %s2783_s7 = sld [smem:[#allocation40_spill]] }
 0x937   : > { %s1635_s5 = sshll.u32 %s2781_s20, 1 }
 0x938   : > { %s1313_s27 = sadd.s32 %s2782_s30, %s1635_s5 }
 0x939   : > { %s1636_s24 = sshll.u32 %s1313_s27, 3  ;;  %s2093_s19 = scalar_lea.hbm %s2783_s7, 32 }
 0x93a   : > { %s1315_s26 = scalar_lea.hbm %s2783_s7, %s1636_s24 }
 0x93b   : > { %s1319_s21 = sshll.u32 %s1315_s26, 4  ;;  %s1320_s21 = int_to_ptr.hbm [resolvable:$true] %s1319_s21 }
 0x93c   : > { %s2087_s6 = sshra.s32 %s1320_s21, 4  ;;  %s2088_s6 = int_to_ptr.hbm [resolvable:$true] %s2087_s6 }
 0x93d   : > { %s2089_s13 = scalar_lea.hbm %s2088_s6, 8  ;;  %p2094_p7 = scmp.lt.s32.totalorder %s2088_s6, %s2783_s7 }
 0x93e   : > { %p2090_p11 = scmp.ne.s32.totalorder %s2088_s6, %s2089_s13  ;;  %p2095_p10 = scmp.lt.s32.totalorder %s2093_s19, %s2089_s13 }
 0x940   : > { %p2091_p12 = pnand %p2090_p11, %p2454_p4  ;;  %p2096_p13 = por %p2095_p10, %p2094_p7 }
 0x942   : > { %p2092_p6 = pneg %p2091_p12 }
 0x944   : > { %p2097_p0 = pnand %p2096_p13, %p2092_p6 }
 0x946   : > { %2100 = shalt.err (!%p2097_p0)
}
 0x947   : > { %1691 = dma.vmem_to_hbm [thread:$0]  (%p2454_p4), %s1318_s28, 128, %s1320_s21, %s1303_s3  }
 0x948 PF: > { %p1726_p2 = scmp.ge.s32.totalorder %s2227_s25, 2  ;;  %s1331_s27 = sand.u32 1, %s2191_s16  }
 0x949   : > { %s1332_s24 = scalar_lea.sflag [#allocation9], %s1331_s27 }
 0x94a   : > { %p1714_p9 = pnand %p1726_p2, %p2461_p5 }
 0x94c   : > { %p1715_p8 = pneg %p1714_p9 }
 0x94e   : > { %2174 = dma.done.wait (%p1715_p8), %s1332_s24, 128  }
 0x94f   : > { %2176 = vsyncadd (%p1715_p8), %s1332_s24, 4294967168  ;;  %s31_s25 = sadd.s32 1, %s2227_s25   ;;  %s2786_s21 = sld [smem:[#allocation28_spill]] }
 0x950   : > { %p2688_p3 = scmp.ge.s32.totalorder %s31_s25, 10   ;;  %s2787_s29 = sld [smem:[#allocation29_spill]] }
 0x951   : > { %s2788_s28 = sld [smem:[#allocation30_spill]]  ;;  %s2790_s13 = smov %s2183_s14 }
 0x952   : > { %s2789_s24 = sld [smem:[#allocation31_spill]]  ;;  %s2791_s14 = smov %s2187_s15 }
 0x953   : > { %s2792_s15 = smov %s2485_s12  ;;  %s2793_s16 = smov %s2195_s17 }
 0x954   : > { %s2794_s17 = smov %s2199_s18  ;;  %s2795_s18 = smov %s2470_s8 }
 0x955   : > { %s2796_s19 = smov %s2215_s22  ;;  %s2797_s20 = smov %s2219_s23 }
 0x956   : > { %s2798_s22 = smov %s2787_s29  ;;  %30 = sbr.rel (!%p2688_p3) target bundleno = 23 (0x17), region = 157 }
 0x957   : > { %s2799_s23 = smov %s2788_s28 }
 0x95b   :  { %1338 = vsyncpa [#allocation8], 1 }
 0x95c   :  { %1340 = vsyncpa [#allocation8 + $0x1], 1 }
 0x95d   :  { %1341 = vsyncpa [#allocation11], 1 }
 0x95e   :  { %1343 = vsyncpa [#allocation11 + $0x1], 1 }
 0x95f   :  { %1344 = vsyncpa [#allocation14], 1 }
 0x960   :  { %1345 = vsyncpa [#allocation17], 1 }
 0x961   :  { %1346 = vsyncpa [#allocation9], 1 }
 0x962   :  { %1348 = vsyncpa [#allocation9 + $0x1], 1 }

</bundles_post_ra>
